<compile_context>
chip_gen: v6e
topology: v6e:2x2x1
jax: 0.10.0
libtpu: 0.0.40
codegen_flags: <defaults>
</compile_context>

<pallas_src>
import jax
import jax.numpy as jnp
from jax.experimental import pallas as pl
from jax.experimental.pallas import tpu as pltpu


def _fused_backbone_fc_call(N, HW, K_RAW, K_PAD, CF, CO, CFC):
    """patches[HW,K] @ conv_w (+bias, ReLU) -> global-avg-pool -> Linear(CF, CO)."""
    n_chunks = CF // CFC
    inv_hw = 1.0 / float(HW)

    def kernel(p_ref, wc_ref, bc_ref, wf_ref, bf_ref, o_ref):
        patches = p_ref[...]                                   # [HW, K_PAD] bf16
        ones_row = jnp.full((1, HW), 1.0, dtype=jnp.float32)   # pooling row (MXU row-sum)
        out = bf_ref[...]                                      # [1, CO] f32
        for c in range(n_chunks):                              # static, unrolled (CF chunks)
            lo = c * CFC
            # Conv as one MXU matmul chunk: bf16 operands, f32 accumulation.
            acc = jnp.dot(patches, wc_ref[:, lo:lo + CFC],
                          preferred_element_type=jnp.float32)  # [HW, CFC] f32
            feat = jnp.maximum(acc + bc_ref[:, lo:lo + CFC], 0.0)
            # Global average pool on the MXU (f32), then the fused f32 Linear chunk.
            pooled = jnp.dot(ones_row, feat,
                             preferred_element_type=jnp.float32) * inv_hw   # [1, CFC]
            out = out + jnp.dot(pooled, wf_ref[lo:lo + CFC, :],
                                preferred_element_type=jnp.float32)         # [1, CO]
        o_ref[0] = out

    flops = N * (2 * HW * K_RAW * CF + 2 * HW * CF + 2 * CF * CO)
    bytes_accessed = (N * HW * K_PAD * 2            # patch slab (bf16)
                      + K_PAD * CF * 2 + CF * 4     # conv weight (bf16) + bias (f32)
                      + CF * CO * 4 + CO * 4        # fc weight + bias (f32)
                      + N * CO * 4)                 # output

    return pl.pallas_call(
        kernel,
        out_shape=jax.ShapeDtypeStruct((N, 1, CO), jnp.float32),
        grid_spec=pltpu.PrefetchScalarGridSpec(
            num_scalar_prefetch=0,
            grid=(N,),
            in_specs=[
                pl.BlockSpec((HW, K_PAD), lambda n: (n, 0)),   # per-image patch slab
                pl.BlockSpec((K_PAD, CF), lambda n: (0, 0)),   # resident conv weight
                pl.BlockSpec((1, CF), lambda n: (0, 0)),       # resident conv bias
                pl.BlockSpec((CF, CO), lambda n: (0, 0)),      # resident fc weight (f32)
                pl.BlockSpec((1, CO), lambda n: (0, 0)),       # resident fc bias
            ],
            out_specs=pl.BlockSpec((1, 1, CO), lambda n: (n, 0, 0)),
        ),
        compiler_params=pltpu.CompilerParams(
            dimension_semantics=("parallel",)),
        cost_estimate=pl.CostEstimate(
            flops=flops, transcendentals=0, bytes_accessed=bytes_accessed),
    )


def prototypical_network_forward(x_nchw, conv_w, conv_b, fc_w, fc_b):
    N, CI, H, W = x_nchw.shape
    CF = conv_w.shape[0]
    CO = fc_w.shape[0]
    HW = H * W                                       # 256 here: multiple of 8 (sublane) and 256 (MXU M)
    K_RAW = 9 * CI
    K_PAD = ((K_RAW + 31) // 32) * 32                # lane/MXU-friendly contraction dim
    CFC = 128 if CF % 128 == 0 else CF               # 128-lane CF chunks keep f32 tiles off the spill path

    # Wrapper-side im2col (3x3, pad=1): lane-dense [N*H*W, K_PAD] bf16 patch slab.
    x = jnp.transpose(x_nchw, (0, 2, 3, 1)).astype(jnp.float32)      # NHWC
    xp = jnp.pad(x, ((0, 0), (1, 1), (1, 1), (0, 0)))
    patches = jnp.concatenate(
        [xp[:, dh:dh + H, dw:dw + W, :] for dh in range(3) for dw in range(3)],
        axis=-1).reshape(N * HW, K_RAW)
    patches = jnp.pad(patches, ((0, 0), (0, K_PAD - K_RAW))).astype(jnp.bfloat16)

    # PyTorch conv weight [CF, CI, 3, 3] -> [(kh, kw, ci), CF], zero-pad K, cast bf16.
    w_conv = jnp.transpose(conv_w, (2, 3, 1, 0)).reshape(K_RAW, CF)
    w_conv = jnp.pad(w_conv, ((0, K_PAD - K_RAW), (0, 0))).astype(jnp.bfloat16)
    b_conv = conv_b.reshape(1, CF).astype(jnp.float32)

    w_fc = fc_w.T.astype(jnp.float32)                # [CF, CO], kept f32 (matches nn.Linear)
    b_fc = fc_b.reshape(1, CO).astype(jnp.float32)

    call = _fused_backbone_fc_call(N, HW, K_RAW, K_PAD, CF, CO, CFC)
    out = call(patches, w_conv, b_conv, w_fc, b_fc)  # [N, 1, CO]
    return out.reshape(N, CO)


# Pure-JAX reference (full f32, highest precision) for a sanity check.
def reference_forward(x_nchw, conv_w, conv_b, fc_w, fc_b):
    N, CI, H, W = x_nchw.shape
    CF = conv_w.shape[0]
    x = jnp.transpose(x_nchw, (0, 2, 3, 1))
    xp = jnp.pad(x, ((0, 0), (1, 1), (1, 1), (0, 0)))
    patches = jnp.concatenate(
        [xp[:, dh:dh + H, dw:dw + W, :] for dh in range(3) for dw in range(3)],
        axis=-1).reshape(N * H * W, 9 * CI)
    w_mm = jnp.transpose(conv_w, (2, 3, 1, 0)).reshape(9 * CI, CF)
    feat = jnp.maximum(
        jnp.dot(patches, w_mm, precision="highest") + conv_b[None, :], 0.0)
    pooled = feat.reshape(N, H * W, CF).mean(axis=1)
    return jnp.dot(pooled, fc_w.T, precision="highest") + fc_b[None, :]


if __name__ == "__main__":
    N, C_in, H, W = 2, 3, 16, 16
    C_feat, C_out = 512, 64

    key = jax.random.PRNGKey(0)
    k_x, k_cw, k_cb, k_fw, k_fb = jax.random.split(key, 5)

    # input: NCHW, like the PyTorch module
    x_nchw = jax.random.normal(k_x, (N, C_in, H, W), jnp.float32)

    # deterministic synthetic parameters (PyTorch-shaped)
    conv_w = jax.random.normal(k_cw, (C_feat, C_in, 3, 3), jnp.float32) * 0.1
    conv_b = jax.random.normal(k_cb, (C_feat,), jnp.float32) * 0.1
    fc_w = jax.random.normal(k_fw, (C_out, C_feat), jnp.float32) * 0.05
    fc_b = jax.random.normal(k_fb, (C_out,), jnp.float32) * 0.05

    out = prototypical_network_forward(x_nchw, conv_w, conv_b, fc_w, fc_b)
    out = jax.block_until_ready(out)
    assert out.shape == (N, C_out) and out.dtype == jnp.float32

    ref = reference_forward(x_nchw, conv_w, conv_b, fc_w, fc_b)
    # bf16 MXU operands for the conv (f32 accumulation, f32 pool/fc) vs full-f32 reference.
    err = float(jnp.max(jnp.abs(out - ref)))
    assert jnp.allclose(out, ref, rtol=2e-2, atol=2e-2), f"mismatch vs reference, max abs err {err}"

    print("KERNEL_OK")
</pallas_src>

<mosaic_0001>
module attributes {stable_mosaic.version = 11 : i64} {
  func.func @kernel(%arg0: i32, %arg1: memref<256x32xbf16, #tpu.memory_space<vmem>>, %arg2: memref<32x512xbf16, #tpu.memory_space<vmem>>, %arg3: memref<1x512xf32, #tpu.memory_space<vmem>>, %arg4: memref<512x64xf32, #tpu.memory_space<vmem>>, %arg5: memref<1x64xf32, #tpu.memory_space<vmem>>, %arg6: memref<1x1x64xf32, #tpu.memory_space<vmem>>) attributes {dimension_semantics = [#tpu.dimension_semantics<parallel>], iteration_bounds = array<i64: 2>, scalar_prefetch = 0 : i64, scratch_operands = 0 : i64, tpu.core_type = #tpu.core_type<tc>, window_params = [{transform_indices = @transform_0, window_bounds = array<i64: 256, 32>}, {pipeline_mode = #tpu.pipeline_mode<synchronous>, transform_indices = @transform_1, window_bounds = array<i64: 32, 512>}, {pipeline_mode = #tpu.pipeline_mode<synchronous>, transform_indices = @transform_2, window_bounds = array<i64: 1, 512>}, {pipeline_mode = #tpu.pipeline_mode<synchronous>, transform_indices = @transform_3, window_bounds = array<i64: 512, 64>}, {pipeline_mode = #tpu.pipeline_mode<synchronous>, transform_indices = @transform_4, window_bounds = array<i64: 1, 64>}, {transform_indices = @transform_5, window_bounds = array<i64: 1, 1, 64>}]} {
    %c0 = arith.constant 0 : index
    %c0_0 = arith.constant 0 : index
    %0 = vector.load %arg1[%c0, %c0_0] : memref<256x32xbf16, #tpu.memory_space<vmem>>, vector<256x32xbf16>
    %cst = arith.constant 1.000000e+00 : f32
    %1 = vector.broadcast %cst : f32 to vector<1x256xf32>
    %c0_1 = arith.constant 0 : index
    %c0_2 = arith.constant 0 : index
    %2 = vector.load %arg5[%c0_1, %c0_2] : memref<1x64xf32, #tpu.memory_space<vmem>>, vector<1x64xf32>
    %c0_3 = arith.constant 0 : index
    %c0_4 = arith.constant 0 : index
    %3 = vector.load %arg2[%c0_3, %c0_4] : memref<32x512xbf16, #tpu.memory_space<vmem>>, vector<32x128xbf16>
    %cst_5 = arith.constant dense<0.000000e+00> : vector<256x128xf32>
    %4 = tpu.matmul %0, %3, %cst_5 {dimension_numbers = #tpu.dot_dimension_numbers<[1], [0], [0], [1], [0, 0, 1, 1], [], []>} : vector<256x32xbf16>, vector<32x128xbf16>, vector<256x128xf32> -> vector<256x128xf32>
    %c0_6 = arith.constant 0 : index
    %c0_7 = arith.constant 0 : index
    %5 = vector.load %arg3[%c0_6, %c0_7] : memref<1x512xf32, #tpu.memory_space<vmem>>, vector<1x128xf32>
    %6 = vector.broadcast %5 : vector<1x128xf32> to vector<256x128xf32>
    %7 = arith.addf %4, %6 : vector<256x128xf32>
    %cst_8 = arith.constant 0.000000e+00 : f32
    %8 = vector.broadcast %cst_8 : f32 to vector<256x128xf32>
    %9 = arith.maximumf %7, %8 : vector<256x128xf32>
    %cst_9 = arith.constant dense<0.000000e+00> : vector<1x128xf32>
    %10 = tpu.matmul %1, %9, %cst_9 {dimension_numbers = #tpu.dot_dimension_numbers<[1], [0], [0], [1], [0, 0, 1, 1], [], []>} : vector<1x256xf32>, vector<256x128xf32>, vector<1x128xf32> -> vector<1x128xf32>
    %cst_10 = arith.constant 3.906250e-03 : f32
    %11 = vector.broadcast %cst_10 : f32 to vector<1x128xf32>
    %12 = arith.mulf %10, %11 : vector<1x128xf32>
    %c0_11 = arith.constant 0 : index
    %c0_12 = arith.constant 0 : index
    %13 = vector.load %arg4[%c0_11, %c0_12] : memref<512x64xf32, #tpu.memory_space<vmem>>, vector<128x64xf32>
    %cst_13 = arith.constant dense<0.000000e+00> : vector<1x64xf32>
    %14 = tpu.matmul %12, %13, %cst_13 {dimension_numbers = #tpu.dot_dimension_numbers<[1], [0], [0], [1], [0, 0, 1, 1], [], []>} : vector<1x128xf32>, vector<128x64xf32>, vector<1x64xf32> -> vector<1x64xf32>
    %15 = arith.addf %2, %14 : vector<1x64xf32>
    %c0_14 = arith.constant 0 : index
    %c128 = arith.constant 128 : index
    %16 = vector.load %arg2[%c0_14, %c128] : memref<32x512xbf16, #tpu.memory_space<vmem>>, vector<32x128xbf16>
    %cst_15 = arith.constant dense<0.000000e+00> : vector<256x128xf32>
    %17 = tpu.matmul %0, %16, %cst_15 {dimension_numbers = #tpu.dot_dimension_numbers<[1], [0], [0], [1], [0, 0, 1, 1], [], []>} : vector<256x32xbf16>, vector<32x128xbf16>, vector<256x128xf32> -> vector<256x128xf32>
    %c0_16 = arith.constant 0 : index
    %c128_17 = arith.constant 128 : index
    %18 = vector.load %arg3[%c0_16, %c128_17] : memref<1x512xf32, #tpu.memory_space<vmem>>, vector<1x128xf32>
    %19 = vector.broadcast %18 : vector<1x128xf32> to vector<256x128xf32>
    %20 = arith.addf %17, %19 : vector<256x128xf32>
    %cst_18 = arith.constant 0.000000e+00 : f32
    %21 = vector.broadcast %cst_18 : f32 to vector<256x128xf32>
    %22 = arith.maximumf %20, %21 : vector<256x128xf32>
    %cst_19 = arith.constant dense<0.000000e+00> : vector<1x128xf32>
    %23 = tpu.matmul %1, %22, %cst_19 {dimension_numbers = #tpu.dot_dimension_numbers<[1], [0], [0], [1], [0, 0, 1, 1], [], []>} : vector<1x256xf32>, vector<256x128xf32>, vector<1x128xf32> -> vector<1x128xf32>
    %cst_20 = arith.constant 3.906250e-03 : f32
    %24 = vector.broadcast %cst_20 : f32 to vector<1x128xf32>
    %25 = arith.mulf %23, %24 : vector<1x128xf32>
    %c128_21 = arith.constant 128 : index
    %c0_22 = arith.constant 0 : index
    %26 = vector.load %arg4[%c128_21, %c0_22] : memref<512x64xf32, #tpu.memory_space<vmem>>, vector<128x64xf32>
    %cst_23 = arith.constant dense<0.000000e+00> : vector<1x64xf32>
    %27 = tpu.matmul %25, %26, %cst_23 {dimension_numbers = #tpu.dot_dimension_numbers<[1], [0], [0], [1], [0, 0, 1, 1], [], []>} : vector<1x128xf32>, vector<128x64xf32>, vector<1x64xf32> -> vector<1x64xf32>
    %28 = arith.addf %15, %27 : vector<1x64xf32>
    %c0_24 = arith.constant 0 : index
    %c256 = arith.constant 256 : index
    %29 = vector.load %arg2[%c0_24, %c256] : memref<32x512xbf16, #tpu.memory_space<vmem>>, vector<32x128xbf16>
    %cst_25 = arith.constant dense<0.000000e+00> : vector<256x128xf32>
    %30 = tpu.matmul %0, %29, %cst_25 {dimension_numbers = #tpu.dot_dimension_numbers<[1], [0], [0], [1], [0, 0, 1, 1], [], []>} : vector<256x32xbf16>, vector<32x128xbf16>, vector<256x128xf32> -> vector<256x128xf32>
    %c0_26 = arith.constant 0 : index
    %c256_27 = arith.constant 256 : index
    %31 = vector.load %arg3[%c0_26, %c256_27] : memref<1x512xf32, #tpu.memory_space<vmem>>, vector<1x128xf32>
    %32 = vector.broadcast %31 : vector<1x128xf32> to vector<256x128xf32>
    %33 = arith.addf %30, %32 : vector<256x128xf32>
    %cst_28 = arith.constant 0.000000e+00 : f32
    %34 = vector.broadcast %cst_28 : f32 to vector<256x128xf32>
    %35 = arith.maximumf %33, %34 : vector<256x128xf32>
    %cst_29 = arith.constant dense<0.000000e+00> : vector<1x128xf32>
    %36 = tpu.matmul %1, %35, %cst_29 {dimension_numbers = #tpu.dot_dimension_numbers<[1], [0], [0], [1], [0, 0, 1, 1], [], []>} : vector<1x256xf32>, vector<256x128xf32>, vector<1x128xf32> -> vector<1x128xf32>
    %cst_30 = arith.constant 3.906250e-03 : f32
    %37 = vector.broadcast %cst_30 : f32 to vector<1x128xf32>
    %38 = arith.mulf %36, %37 : vector<1x128xf32>
    %c256_31 = arith.constant 256 : index
    %c0_32 = arith.constant 0 : index
    %39 = vector.load %arg4[%c256_31, %c0_32] : memref<512x64xf32, #tpu.memory_space<vmem>>, vector<128x64xf32>
    %cst_33 = arith.constant dense<0.000000e+00> : vector<1x64xf32>
    %40 = tpu.matmul %38, %39, %cst_33 {dimension_numbers = #tpu.dot_dimension_numbers<[1], [0], [0], [1], [0, 0, 1, 1], [], []>} : vector<1x128xf32>, vector<128x64xf32>, vector<1x64xf32> -> vector<1x64xf32>
    %41 = arith.addf %28, %40 : vector<1x64xf32>
    %c0_34 = arith.constant 0 : index
    %c384 = arith.constant 384 : index
    %42 = vector.load %arg2[%c0_34, %c384] : memref<32x512xbf16, #tpu.memory_space<vmem>>, vector<32x128xbf16>
    %cst_35 = arith.constant dense<0.000000e+00> : vector<256x128xf32>
    %43 = tpu.matmul %0, %42, %cst_35 {dimension_numbers = #tpu.dot_dimension_numbers<[1], [0], [0], [1], [0, 0, 1, 1], [], []>} : vector<256x32xbf16>, vector<32x128xbf16>, vector<256x128xf32> -> vector<256x128xf32>
    %c0_36 = arith.constant 0 : index
    %c384_37 = arith.constant 384 : index
    %44 = vector.load %arg3[%c0_36, %c384_37] : memref<1x512xf32, #tpu.memory_space<vmem>>, vector<1x128xf32>
    %45 = vector.broadcast %44 : vector<1x128xf32> to vector<256x128xf32>
    %46 = arith.addf %43, %45 : vector<256x128xf32>
    %cst_38 = arith.constant 0.000000e+00 : f32
    %47 = vector.broadcast %cst_38 : f32 to vector<256x128xf32>
    %48 = arith.maximumf %46, %47 : vector<256x128xf32>
    %cst_39 = arith.constant dense<0.000000e+00> : vector<1x128xf32>
    %49 = tpu.matmul %1, %48, %cst_39 {dimension_numbers = #tpu.dot_dimension_numbers<[1], [0], [0], [1], [0, 0, 1, 1], [], []>} : vector<1x256xf32>, vector<256x128xf32>, vector<1x128xf32> -> vector<1x128xf32>
    %cst_40 = arith.constant 3.906250e-03 : f32
    %50 = vector.broadcast %cst_40 : f32 to vector<1x128xf32>
    %51 = arith.mulf %49, %50 : vector<1x128xf32>
    %c384_41 = arith.constant 384 : index
    %c0_42 = arith.constant 0 : index
    %52 = vector.load %arg4[%c384_41, %c0_42] : memref<512x64xf32, #tpu.memory_space<vmem>>, vector<128x64xf32>
    %cst_43 = arith.constant dense<0.000000e+00> : vector<1x64xf32>
    %53 = tpu.matmul %51, %52, %cst_43 {dimension_numbers = #tpu.dot_dimension_numbers<[1], [0], [0], [1], [0, 0, 1, 1], [], []>} : vector<1x128xf32>, vector<128x64xf32>, vector<1x64xf32> -> vector<1x64xf32>
    %54 = arith.addf %41, %53 : vector<1x64xf32>
    %c0_44 = arith.constant 0 : index
    %c0_45 = arith.constant 0 : index
    %c0_46 = arith.constant 0 : index
    %55 = vector.load %arg6[%c0_44, %c0_45, %c0_46] : memref<1x1x64xf32, #tpu.memory_space<vmem>>, vector<1x1x64xf32>
    %56 = vector.shape_cast %55 : vector<1x1x64xf32> to vector<1x64xf32>
    %57 = vector.shape_cast %54 : vector<1x64xf32> to vector<1x1x64xf32>
    tpu.vector_store %arg6[%c0_44, %c0_45, %c0_46], %57 {strides = array<i32>} : memref<1x1x64xf32, #tpu.memory_space<vmem>>, vector<1x1x64xf32>,
    return
  }
  func.func @transform_0(%arg0: i32) -> (i32, i32) {
    %c0_i32 = arith.constant 0 : i32
    %c0_i32_0 = arith.constant 0 : i32
    return %arg0, %c0_i32 : i32, i32
  }
  func.func @transform_1(%arg0: i32) -> (i32, i32) {
    %c0_i32 = arith.constant 0 : i32
    %c0_i32_0 = arith.constant 0 : i32
    %c0_i32_1 = arith.constant 0 : i32
    return %c0_i32, %c0_i32_0 : i32, i32
  }
  func.func @transform_2(%arg0: i32) -> (i32, i32) {
    %c0_i32 = arith.constant 0 : i32
    %c0_i32_0 = arith.constant 0 : i32
    %c0_i32_1 = arith.constant 0 : i32
    return %c0_i32, %c0_i32_0 : i32, i32
  }
  func.func @transform_3(%arg0: i32) -> (i32, i32) {
    %c0_i32 = arith.constant 0 : i32
    %c0_i32_0 = arith.constant 0 : i32
    %c0_i32_1 = arith.constant 0 : i32
    return %c0_i32, %c0_i32_0 : i32, i32
  }
  func.func @transform_4(%arg0: i32) -> (i32, i32) {
    %c0_i32 = arith.constant 0 : i32
    %c0_i32_0 = arith.constant 0 : i32
    %c0_i32_1 = arith.constant 0 : i32
    return %c0_i32, %c0_i32_0 : i32, i32
  }
  func.func @transform_5(%arg0: i32) -> (i32, i32, i32) {
    %c0_i32 = arith.constant 0 : i32
    %c0_i32_0 = arith.constant 0 : i32
    %c0_i32_1 = arith.constant 0 : i32
    return %arg0, %c0_i32, %c0_i32_0 : i32, i32, i32
  }
}

</mosaic_0001>

<bundles_post_ra>
// kernel: tpu_custom_call.1
= control target key start
LH: loop header
LB: loop body
LE: loop exit
PB: predicated region body
PF: predicated region fallthrough
CT: control target
= control target key end

     0   :  { %10 = vsyncpa [#allocation3], 0  ;;  %s3788_s0 = inlined_call_operand.vmem [shape: bf16[512,32], index: 0, kind: input, shape index: {}]   ;;  %s3789_s1 = inlined_call_operand.vmem [shape: bf16[32,512], index: 1, kind: input, shape index: {}]   ;;  %s3790_s2 = inlined_call_operand.vmem [shape: f32[1,512], index: 2, kind: input, shape index: {}]   ;;  %s3791_s3 = inlined_call_operand.vmem [shape: f32[512,64], index: 3, kind: input, shape index: {}]   ;;  %s3792_s4 = inlined_call_operand.vmem [shape: f32[1,64], index: 4, kind: input, shape index: {}]   ;;  %s3793_s5 = inlined_call_operand.hbm [shape: f32[2,1,64], index: 5, kind: output, shape index: {}]  }
   0x1   :  { %12 = vsyncpa [#allocation3 + $0x1], 0  ;;  %s2780_s18 = smov 0   ;;  %s2782_s19 = smov 0  }
   0x2   :  { %s2784_s20 = smov 0   ;;  %s2786_s21 = smov 0  }
   0x3 LB: > { %s2801_s22 = sadd.s32 4294967295, %s2744_s21   ;;  %s1953_s23 = sadd.s32 4294967294, %s2744_s21   ;;  %s2744_s21 = sphi %s2786_s21, %s3799_s21   ;;  %s2740_s20 = sphi %s2784_s20, %s3798_s20   ;;  %s2736_s19 = sphi %s2782_s19, %s3797_s19   ;;  %s2732_s18 = sphi %s2780_s18, %s3796_s18  }
   0x4   : > { %s2805_s24 = sadd.s32 1, %s2744_s21   ;;  %s135_s25 = sadd.s32 1, %s2740_s20 }
   0x5   : > { %s132_s26 = ssub.s32 %s2744_s21, %s2805_s24  ;;  %p145_p0 = scmp.ne.s32.totalorder %s2740_s20, %s2736_s19 }
   0x6   : > { %p133_p1 = scmp.eq.s32.totalorder %s132_s26, 0  ;;  %p146_p2 = scmp.eq.s32.totalorder %s2801_s22, 1 }
   0x7   : > { %p151_p3 = scmp.ne.s32.totalorder %s2736_s19, %s2732_s18  ;;  %p152_p4 = scmp.eq.s32.totalorder %s1953_s23, 1 }
   0x8   : > { %s2816_s27 = scalar_select %p133_p1, %s2740_s20, %s135_s25  }
   0x9   : > { %p2818_p5 = por %p146_p2, %p145_p0  ;;  %p2822_p6 = por %p152_p4, %p151_p3 }
   0xa   : > { %p1956_p7 = scmp.ge.s32.totalorder %s2744_s21, 1  ;;  %p191_p8 = scmp.lt.s32.totalorder %s2744_s21, 3 }
   0xc   : > { %p192_p9 = pnand %p1956_p7, %p191_p8 }
   0xd   : > { %s1957_s9 = sshll.u32 (!%p192_p9), %s2801_s22, 5  ;;  %s216_s26 = sand.u32 (!%p192_p9), 1, %s2736_s19  }
   0xe   : > { %195 = sbr.rel (%p192_p9) target bundleno = 1417 (0x589), region = 40  ;;  %p219_p10 = scmp.lt.s32.totalorder (!%p192_p9), %s1957_s9, 63 }
   0xf   : > { %s2051_s30 = sshll.u32 (!%p192_p9), %s2801_s22, 4  ;;  %s217_s6 = scalar_lea.vmem (!%p192_p9), [#allocation2], %s216_s26 }
  0x10   : > { %s1898_s7 = sshll.u32 (!%p192_p9), %s217_s6, 4  ;;  %s3753_s10 = scalar_lea.hbm (!%p192_p9), %s3793_s5, %s2051_s30  ;;  %s1899_s7 = int_to_ptr.vmem [resolvable:$true] %s1898_s7 }
  0x11   : > { %s1886_s11 = scalar_lea.sflag (!%p192_p9), [#allocation3], %s216_s26  ;;  %s2749_s22 = smov (!%p192_p9), [#allocation2]  }
  0x12   : > { %s2688_s13 = sshll.u32 (!%p192_p9), %s2749_s22, 4  ;;  %s2689_s13 = int_to_ptr.vmem [resolvable:$false] %s2688_s13 }
  0x13   : > { %v2660_v0 = vld [vmem:[%s3789_s1 + $0x20] ss:$16 sps:$4 sm:$0xff]   ;;  %v2678_v2 = vld [vmem:[%s3789_s1 + $0x24] ss:$16 sps:$4 sm:$0xff]   ;;  %s3801_s9 = smov (!%p219_p10, %s1957_s9), 63  ;;  %vm361_vm0 = vcmask 261120   ;;  %p2691_p0 = scmp.lt.s32.totalorder %s1899_s7, %s2689_s13 }
  0x14   : > { %v2661_v1 = vld [vmem:[%s3789_s1] ss:$16 sps:$4 sm:$0xff]   ;;  %2334 = vmatprep.subr.bf16.mxu0 %v2660_v0  ;;  %s1958_s12 = sshll.u32 %s3801_s9, 2  ;;  %v2679_v19 = vld [vmem:[%s3789_s1 + $0x4] ss:$16 sps:$4 sm:$0xff]   ;;  %v2746_v20 = vmov 1.0  }
  0x15   : > { %2335 = vmatpush3.bf16.msra.mxu0 %v2660_v0  ;;  %s2841_s15 = scalar_lea.vmem %s3788_s0, %s1958_s12  ;;  %667 = vmatprep.mubr.f32.mxu1 %v2746_v20  ;;  %v2680_v21 = vld [vmem:[%s3789_s1 + $0x28] ss:$16 sps:$4 sm:$0xff]   ;;  %v3032_v53 = vld [vmem:[%s3790_s2] ss:$0 sm:$0xff]  ;;  %vm2748_vm1 = vmmov 0   ;;  %vm1883_vm2 = vcmask 516096  }
  0x16   : > { %2336 = vmatprep.subr.bf16.mxu0 %v2661_v1  ;;  %v2844_v3 = vld [vmem:[%s2841_s15] sm:$0xff]   ;;  %v2847_v4 = vld [vmem:[%s2841_s15 + $0x8] sm:$0xff]   ;;  %v2852_v5 = vld [vmem:[%s2841_s15 + $0x10] sm:$0xff]   ;;  %s2684_s12 = scalar_lea.vmem %s1899_s7, 16  ;;  %s2690_s14 = scalar_lea.vmem %s2689_s13, 32 }
  0x17   : > { %2338 = vmatprep.mubr.msk.bf16.mxu0 %vm361_vm0, %v2844_v3  ;;  %v2859_v6 = vld [vmem:[%s2841_s15 + $0x18] sm:$0xff]   ;;  %v2862_v7 = vld [vmem:[%s2841_s15 + $0x20] sm:$0xff]   ;;  %v2869_v8 = vld [vmem:[%s2841_s15 + $0x28] sm:$0xff]   ;;  %p2685_p11 = scmp.ne.s32.totalorder %s1899_s7, %s2684_s12  ;;  %p2692_p1 = scmp.lt.s32.totalorder %s2690_s14, %s2684_s12 }
  0x18   : > { %v2872_v9 = vld [vmem:[%s2841_s15 + $0x30] sm:$0xff]   ;;  %v2879_v10 = vld [vmem:[%s2841_s15 + $0x38] sm:$0xff]   ;;  %v2882_v11 = vld [vmem:[%s2841_s15 + $0x40] sm:$0xff]  }
  0x19   : > { %2337 = vmatpush3.bf16.msra.mxu0 %v2661_v1  ;;  %v2889_v12 = vld [vmem:[%s2841_s15 + $0x48] sm:$0xff]   ;;  %v2892_v13 = vld [vmem:[%s2841_s15 + $0x50] sm:$0xff]   ;;  %v2899_v14 = vld [vmem:[%s2841_s15 + $0x58] sm:$0xff]   ;;  %p2686_p12 = pnand %p2685_p11, %p2818_p5  ;;  %p2693_p2 = por %p2692_p1, %p2691_p0 }
  0x1a   : > { %2405 = vmatprep.subr.bf16.mxu0 %v2678_v2  ;;  %v2902_v15 = vld [vmem:[%s2841_s15 + $0x60] sm:$0xff]   ;;  %v2909_v16 = vld [vmem:[%s2841_s15 + $0x68] sm:$0xff]   ;;  %v2912_v17 = vld [vmem:[%s2841_s15 + $0x70] sm:$0xff]  }
  0x1b   : > { %v2919_v18 = vld [vmem:[%s2841_s15 + $0x78] sm:$0xff]   ;;  %p2687_p13 = pneg %p2686_p12 }
  0x1c   : > { %2339 = vmatmul.mubr.msk.bf16.vlgmr.msra.gmra.mxu0 %vm361_vm0, %v2847_v4  ;;  %v2681_v22 = vld [vmem:[%s3789_s1 + $0x8] ss:$16 sps:$4 sm:$0xff]  }
  0x1d   : > { %2342 = vmatprep.mubr.msk.bf16.mxu0 %vm361_vm0, %v2852_v5  ;;  %2406 = vmatpush3.bf16.msra.mxu0 %v2678_v2  ;;  %p2694_p3 = pnand %p2693_p2, %p2687_p13 }
  0x1e   : > { %2407 = vmatprep.subr.bf16.mxu0 %v2679_v19 }
  0x21   : > { %2408 = vmatpush3.bf16.msra.mxu0 %v2679_v19 }
  0x22   : > { %2476 = vmatprep.subr.bf16.mxu0 %v2680_v21 }
  0x24   : > { %2343 = vmatmul.mubr.msk.bf16.gmra.mxu0 %vm361_vm0, %v2859_v6 }
  0x25   : > { %2346 = vmatprep.mubr.msk.bf16.mxu0 %vm361_vm0, %v2862_v7 }
  0x2c   : > { %2347 = vmatmul.mubr.msk.bf16.gmra.mxu0 %vm361_vm0, %v2869_v8 }
  0x2d   : > { %2350 = vmatprep.mubr.msk.bf16.mxu0 %vm361_vm0, %v2872_v9 }
  0x34   : > { %2351 = vmatmul.mubr.msk.bf16.gmra.mxu0 %vm361_vm0, %v2879_v10 }
  0x35   : > { %2354 = vmatprep.mubr.msk.bf16.mxu0 %vm361_vm0, %v2882_v11 }
  0x3c   : > { %2355 = vmatmul.mubr.msk.bf16.gmra.mxu0 %vm361_vm0, %v2889_v12 }
  0x3d   : > { %2358 = vmatprep.mubr.msk.bf16.mxu0 %vm361_vm0, %v2892_v13 }
  0x44   : > { %2359 = vmatmul.mubr.msk.bf16.gmra.mxu0 %vm361_vm0, %v2899_v14 }
  0x45   : > { %2362 = vmatprep.mubr.msk.bf16.mxu0 %vm361_vm0, %v2902_v15 }
  0x4c   : > { %2363 = vmatmul.mubr.msk.bf16.gmra.mxu0 %vm361_vm0, %v2909_v16 }
  0x4d   : > { %2366 = vmatprep.mubr.msk.bf16.mxu0 %vm361_vm0, %v2912_v17 }
  0x54   : > { %2367 = vmatmul.mubr.msk.bf16.gmra.mxu0 %vm361_vm0, %v2919_v18 }
  0x55   : > { %2409 = vmatprep.mubr.msk.bf16.mxu0 %vm361_vm0, %v2844_v3 }
  0x5c   : > { %2410 = vmatmul.mubr.msk.bf16.vlgmr.msra.gmra.mxu0 %vm361_vm0, %v2847_v4 }
  0x5d   : > { %2413 = vmatprep.mubr.msk.bf16.mxu0 %vm361_vm0, %v2852_v5  ;;  %2477 = vmatpush3.bf16.msra.mxu0 %v2680_v21 }
  0x5e   : > { %2478 = vmatprep.subr.bf16.mxu0 %v2681_v22 }
  0x61   : > { %2479 = vmatpush3.bf16.msra.mxu0 %v2681_v22 }
  0x64   : > { %2414 = vmatmul.mubr.msk.bf16.gmra.mxu0 %vm361_vm0, %v2859_v6 }
  0x65   : > { %2417 = vmatprep.mubr.msk.bf16.mxu0 %vm361_vm0, %v2862_v7 }
  0x6c   : > { %2418 = vmatmul.mubr.msk.bf16.gmra.mxu0 %vm361_vm0, %v2869_v8 }
  0x6d   : > { %2421 = vmatprep.mubr.msk.bf16.mxu0 %vm361_vm0, %v2872_v9 }
  0x74   : > { %2422 = vmatmul.mubr.msk.bf16.gmra.mxu0 %vm361_vm0, %v2879_v10 }
  0x75   : > { %2425 = vmatprep.mubr.msk.bf16.mxu0 %vm361_vm0, %v2882_v11 }
  0x7c   : > { %2426 = vmatmul.mubr.msk.bf16.gmra.mxu0 %vm361_vm0, %v2889_v12 }
  0x7d   : > { %2429 = vmatprep.mubr.msk.bf16.mxu0 %vm361_vm0, %v2892_v13 }
  0x84   : > { %2430 = vmatmul.mubr.msk.bf16.gmra.mxu0 %vm361_vm0, %v2899_v14 }
  0x85   : > { %2433 = vmatprep.mubr.msk.bf16.mxu0 %vm361_vm0, %v2902_v15 }
  0x8c   : > { %2434 = vmatmul.mubr.msk.bf16.gmra.mxu0 %vm361_vm0, %v2909_v16 }
  0x8d   : > { %2437 = vmatprep.mubr.msk.bf16.mxu0 %vm361_vm0, %v2912_v17 }
  0x94   : > { %2438 = vmatmul.mubr.msk.bf16.gmra.mxu0 %vm361_vm0, %v2919_v18 }
  0x95   : > { %2480 = vmatprep.mubr.msk.bf16.mxu0 %vm361_vm0, %v2844_v3 }
  0x9c   : > { %2481 = vmatmul.mubr.msk.bf16.vlgmr.msra.gmra.mxu0 %vm361_vm0, %v2847_v4 }
  0x9d   : > { %2484 = vmatprep.mubr.msk.bf16.mxu0 %vm361_vm0, %v2852_v5 }
  0xa4   : > { %2485 = vmatmul.mubr.msk.bf16.gmra.mxu0 %vm361_vm0, %v2859_v6 }
  0xa5   : > { %2488 = vmatprep.mubr.msk.bf16.mxu0 %vm361_vm0, %v2862_v7 }
  0xac   : > { %2489 = vmatmul.mubr.msk.bf16.gmra.mxu0 %vm361_vm0, %v2869_v8 }
  0xad   : > { %2492 = vmatprep.mubr.msk.bf16.mxu0 %vm361_vm0, %v2872_v9 }
  0xb4   : > { %2493 = vmatmul.mubr.msk.bf16.gmra.mxu0 %vm361_vm0, %v2879_v10 }
  0xb5   : > { %2496 = vmatprep.mubr.msk.bf16.mxu0 %vm361_vm0, %v2882_v11 }
  0xbc   : > { %2497 = vmatmul.mubr.msk.bf16.gmra.mxu0 %vm361_vm0, %v2889_v12 }
  0xbd   : > { %2500 = vmatprep.mubr.msk.bf16.mxu0 %vm361_vm0, %v2892_v13 }
  0xc4   : > { %2501 = vmatmul.mubr.msk.bf16.gmra.mxu0 %vm361_vm0, %v2899_v14 }
  0xc5   : > { %2504 = vmatprep.mubr.msk.bf16.mxu0 %vm361_vm0, %v2902_v15 }
  0xcc   : > { %2505 = vmatmul.mubr.msk.bf16.gmra.mxu0 %vm361_vm0, %v2909_v16 }
  0xcd   : > { %2508 = vmatprep.mubr.msk.bf16.mxu0 %vm361_vm0, %v2912_v17 }
  0xd4   : > { %2509 = vmatmul.mubr.msk.bf16.gmra.mxu0 %vm361_vm0, %v2919_v18 }
  0xd5   : > { %2551 = vmatprep.mubr.msk.bf16.mxu0 %vm361_vm0, %v2844_v3 }
  0xdc   : > { %v2979_v23 = vpop.f32.mrf.mxu0 }
  0xde   : > { %v2981_v24 = vpop.f32.mrf.mxu0 }
  0xe0   : > { %v2985_v25 = vpop.f32.mrf.mxu0 }
  0xe2   : > { %v2989_v26 = vpop.f32.mrf.mxu0 }
  0xe4   : > { %v2991_v27 = vpop.f32.mrf.mxu0 }
  0xe6   : > { %v2993_v28 = vpop.f32.mrf.mxu0 }
  0xe8   : > { %v2997_v29 = vpop.f32.mrf.mxu0 }
  0xea   : > { %v3001_v30 = vpop.f32.mrf.mxu0 }
  0xec   : > { %v2348_v31 = vpop.f32.mrf.mxu0 }
  0xee   : > { %v3003_v32 = vpop.f32.mrf.mxu0 }
  0xf0   : > { %v2349_v33 = vpop.f32.mrf.mxu0 }
  0xf1   : > { %v488_v22 = vadd.f32 %v2349_v33, %v3032_v53 }
  0xf2   : > { %v479_v34 = vpop.f32.mrf.mxu0 }
  0xf4   : > { %v2352_v35 = vpop.f32.mrf.mxu0 }
  0xf5   : > { %v501_v58 = vadd.f32 %v2352_v35, %v3032_v53 }
  0xf6   : > { %v492_v36 = vpop.f32.mrf.mxu0 }
  0xf7   : > { %v585_v2 = vmax.f32 %v501_v58, 0.0  ;;  %v493_v3 = vadd.f32 %v3032_v53, %v492_v36 }
  0xf8   : > { %v2353_v37 = vpop.f32.mrf.mxu0 }
  0xf9   : > { %v504_v54 = vadd.f32 %v2353_v37, %v3032_v53 }
  0xfa   : > { %v495_v38 = vpop.f32.mrf.mxu0 }
  0xfb   : > { %v586_v62 = vmax.f32 %v504_v54, 0.0  ;;  %v496_v63 = vadd.f32 %v3032_v53, %v495_v38  ;;  %v485_v38 = vadd.f32 %v2348_v31, %v3032_v53 }
  0xfc   : > { %v3013_v39 = vpop.f32.mrf.mxu0 }
  0xfd   : > { %v584_v35 = vmax.f32 %v496_v63, 0.0 }
  0xfe   : > { %v3015_v40 = vpop.f32.mrf.mxu0 }
 0x100   : > { %v3019_v41 = vpop.f32.mrf.mxu0 }
 0x102   : > { %v3023_v42 = vpop.f32.mrf.mxu0 }
 0x104   : > { %v2360_v43 = vpop.f32.mrf.mxu0 }
 0x106   : > { %v3025_v44 = vpop.f32.mrf.mxu0 }
 0x108   : > { %v2361_v45 = vpop.f32.mrf.mxu0 }
 0x109   : > { %v536_v31 = vadd.f32 %v2361_v45, %v3032_v53  ;;  %v469_v45 = vadd.f32 %v2991_v27, %v3032_v53 }
 0x10a   : > { %v3027_v46 = vpop.f32.mrf.mxu0 }
 0x10b   : > { %v594_v63 = vmax.f32 %v536_v31, 0.0 }
 0x10c   : > { %v2364_v47 = vpop.f32.mrf.mxu0 }
 0x10d   : > { %v549_v37 = vadd.f32 %v2364_v47, %v3032_v53  ;;  %v477_v47 = vadd.f32 %v3032_v53, %v3003_v32 }
 0x10e   : > { %v540_v48 = vpop.f32.mrf.mxu0 }
 0x10f   : > { %v541_v33 = vadd.f32 %v3032_v53, %v540_v48  ;;  %v533_v48 = vadd.f32 %v2360_v43, %v3032_v53  ;;  %v464_v43 = vadd.f32 %v3032_v53, %v3001_v30  ;;  %v520_v30 = vadd.f32 %v3019_v41, %v3032_v53 }
 0x110   : > { %v2365_v49 = vpop.f32.mrf.mxu0  ;;  %v453_v41 = vadd.f32 %v2979_v23, %v3032_v53 }
 0x111   : > { %v552_v19 = vadd.f32 %v2365_v49, %v3032_v53  ;;  %v480_v49 = vadd.f32 %v3032_v53, %v479_v34  ;;  %v472_v34 = vadd.f32 %v2997_v29, %v3032_v53  ;;  %v593_v27 = vmax.f32 %v533_v48, 0.0 }
 0x112   : > { %v543_v50 = vpop.f32.mrf.mxu0 }
 0x113   : > { %v598_v54 = vmax.f32 %v552_v19, 0.0  ;;  %v544_v36 = vadd.f32 %v3032_v53, %v543_v50  ;;  %v3055_v50 = vld [vmem:[%s3790_s2 + $0x1] ss:$0 sm:$0xff] }
 0x114   : > { %v2368_v51 = vpop.f32.mrf.mxu0 }
 0x115   : > { %v565_v56 = vadd.f32 %v2368_v51, %v3032_v53  ;;  %v596_v58 = vmax.f32 %v544_v36, 0.0 }
 0x116   : > { %v556_v52 = vpop.f32.mrf.mxu0 }
 0x117   : > { %v601_v0 = vmax.f32 %v565_v56, 0.0  ;;  %v557_v1 = vadd.f32 %v3032_v53, %v556_v52  ;;  %v583_v52 = vmax.f32 %v493_v3, 0.0  ;;  %v597_v56 = vmax.f32 %v549_v37, 0.0 }
 0x118   : > { %v2369_v55 = vpop.f32.mrf.mxu0  ;;  %v525_v3 = vadd.f32 %v3032_v53, %v3025_v44  ;;  %v576_v44 = vmax.f32 %v464_v43, 0.0 }
 0x119   : > { %v568_v57 = vadd.f32 %v2369_v55, %v3032_v53  ;;  %v599_v51 = vmax.f32 %v557_v1, 0.0  ;;  %v582_v55 = vmax.f32 %v488_v22, 0.0  ;;  %v578_v1 = vmax.f32 %v472_v34, 0.0 }
 0x11a   : > { %v559_v59 = vpop.f32.mrf.mxu0 }
 0x11b   : > { %v560_v60 = vadd.f32 %v3032_v53, %v559_v59  ;;  %v602_v61 = vmax.f32 %v568_v57, 0.0  ;;  %v581_v57 = vmax.f32 %v485_v38, 0.0  ;;  %v580_v59 = vmax.f32 %v480_v49, 0.0 }
 0x11c   : > { %v2411_v32 = vpop.f32.mrf.mxu0  ;;  %v512_v49 = vadd.f32 %v3032_v53, %v3023_v42  ;;  %v445_v42 = vadd.f32 %v3032_v53, %v2981_v24 }
 0x11d   : > { %2072 = vmatprep.subr.mxu1 %v602_v61  ;;  %v600_v21 = vmax.f32 %v560_v60, 0.0  ;;  %v595_v60 = vmax.f32 %v541_v33, 0.0  ;;  %v579_v61 = vmax.f32 %v477_v47, 0.0  ;;  %v509_v47 = vadd.f32 %v3032_v53, %v3015_v40 }
 0x11e   : > { %2073 = vmatpush3.msra.mxu1 %v586_v62  ;;  %v3063_v62 = vadd.f32 %v2411_v32, %v3055_v50  ;;  %v818_v29 = vpop.f32.mrf.mxu0 }
 0x11f   : > { %2074 = vmatprep.subr.mxu1 %v601_v0  ;;  %v528_v0 = vadd.f32 %v3032_v53, %v3027_v46  ;;  %v461_v46 = vadd.f32 %v3032_v53, %v2993_v28  ;;  %v517_v28 = vadd.f32 %v3013_v39, %v3032_v53  ;;  %v448_v39 = vadd.f32 %v3032_v53, %v2989_v26 }
 0x120   : > { %2075 = vmatpush3.msra.mxu1 %v585_v2  ;;  %v3070_v2 = vadd.f32 %v3055_v50, %v818_v29  ;;  %v2412_v19 = vpop.f32.mrf.mxu0  ;;  %v587_v32 = vmax.f32 %v509_v47, 0.0  ;;  %v2747_v29 = vmov 0.0  }
 0x121   : > { %2076 = vmatprep.subr.mxu1 %v600_v21  ;;  %v577_v21 = vmax.f32 %v469_v45, 0.0  ;;  %v3077_v22 = vadd.f32 %v2412_v19, %v3055_v50  ;;  %v575_v36 = vmax.f32 %v461_v46, 0.0  ;;  %v589_v23 = vmax.f32 %v517_v28, 0.0  ;;  %v686_v46 = vld [vmem:[%s3791_s3 + $0x60] sm:$0xff]  ;;  %v684_v28 = vld [vmem:[%s3791_s3 + $0x50] sm:$0xff] }
 0x122   : > { %2077 = vmatpush3.msra.mxu1 %v584_v35  ;;  %v592_v35 = vmax.f32 %v528_v0, 0.0  ;;  %v821_v37 = vpop.f32.mrf.mxu0  ;;  %v572_v48 = vmax.f32 %v448_v39, 0.0  ;;  %v571_v45 = vmax.f32 %v445_v42, 0.0  ;;  %v681_v39 = vld [vmem:[%s3791_s3 + $0x38] sm:$0xff] }
 0x123   : > { %2078 = vmatprep.subr.mxu1 %v599_v51  ;;  %v456_v51 = vadd.f32 %v2985_v25, %v3032_v53  ;;  %v3084_v38 = vadd.f32 %v3055_v50, %v821_v37  ;;  %v590_v25 = vmax.f32 %v520_v30, 0.0  ;;  %v689_v53 = vld [vmem:[%s3791_s3 + $0x78] sm:$0xff] }
 0x124   : > { %2079 = vmatpush3.msra.mxu1 %v583_v52  ;;  %v591_v52 = vmax.f32 %v525_v3, 0.0  ;;  %v687_v3 = vld [vmem:[%s3791_s3 + $0x68] sm:$0xff]  ;;  %v685_v37 = vld [vmem:[%s3791_s3 + $0x58] sm:$0xff] }
 0x125   : > { %2080 = vmatprep.subr.mxu1 %v598_v54  ;;  %v2415_v54 = vpop.f32.mrf.mxu0  ;;  %v574_v33 = vmax.f32 %v456_v51, 0.0 }
 0x126   : > { %2081 = vmatpush3.msra.mxu1 %v582_v55  ;;  %v3091_v55 = vadd.f32 %v2415_v54, %v3055_v50 }
 0x127   : > { %2082 = vmatprep.subr.mxu1 %v597_v56  ;;  %v834_v56 = vpop.f32.mrf.mxu0 }
 0x128   : > { %2083 = vmatpush3.msra.mxu1 %v581_v57  ;;  %v3098_v57 = vadd.f32 %v3055_v50, %v834_v56 }
 0x129   : > { %2084 = vmatprep.subr.mxu1 %v596_v58  ;;  %v2416_v31 = vpop.f32.mrf.mxu0  ;;  %v573_v58 = vmax.f32 %v453_v41, 0.0  ;;  %v683_v41 = vld [vmem:[%s3791_s3 + $0x48] sm:$0xff] }
 0x12a   : > { %2085 = vmatpush3.msra.mxu1 %v580_v59  ;;  %v3105_v34 = vadd.f32 %v2416_v31, %v3055_v50  ;;  %v588_v59 = vmax.f32 %v512_v49, 0.0  ;;  %v682_v49 = vld [vmem:[%s3791_s3 + $0x40] sm:$0xff]  ;;  %v680_v31 = vld [vmem:[%s3791_s3 + $0x30] sm:$0xff] }
 0x12b   : > { %2086 = vmatprep.subr.mxu1 %v595_v60  ;;  %v837_v26 = vpop.f32.mrf.mxu0 }
 0x12c   : > { %2087 = vmatpush3.msra.mxu1 %v579_v61  ;;  %v3108_v60 = vadd.f32 %v3055_v50, %v837_v26 }
 0x12d   : > { %2088 = vmatprep.subr.mxu1 %v594_v63  ;;  %v2419_v40 = vpop.f32.mrf.mxu0 }
 0x12e   : > { %2089 = vmatpush3.msra.mxu1 %v578_v1  ;;  %v3111_v61 = vadd.f32 %v2419_v40, %v3055_v50  ;;  %v688_v1 = vld [vmem:[%s3791_s3 + $0x70] sm:$0xff] }
 0x12f   : > { %2090 = vmatprep.subr.mxu1 %v593_v27  ;;  %v850_v24 = vpop.f32.mrf.mxu0 }
 0x130   : > { %2091 = vmatpush3.msra.mxu1 %v577_v21  ;;  %v3117_v63 = vadd.f32 %v3055_v50, %v850_v24  ;;  %v677_v24 = vld [vmem:[%s3791_s3 + $0x18] sm:$0xff] }
 0x131   : > { %2092 = vmatprep.subr.mxu1 %v592_v35  ;;  %v2420_v0 = vpop.f32.mrf.mxu0 }
 0x132   : > { %2093 = vmatpush3.msra.mxu1 %v576_v44  ;;  %v3125_v43 = vadd.f32 %v2420_v0, %v3055_v50 }
 0x133   : > { %2094 = vmatprep.subr.mxu1 %v591_v52  ;;  %v853_v27 = vpop.f32.mrf.mxu0 }
 0x134   : > { %2095 = vmatpush3.msra.mxu1 %v575_v36  ;;  %v3132_v19 = vadd.f32 %v3055_v50, %v853_v27 }
 0x135   : > { %2096 = vmatprep.subr.mxu1 %v590_v25  ;;  %v2423_v21 = vpop.f32.mrf.mxu0 }
 0x136   : > { %2097 = vmatpush3.msra.mxu1 %v574_v33  ;;  %v3139_v30 = vadd.f32 %v2423_v21, %v3055_v50  ;;  %v675_v21 = vld [vmem:[%s3791_s3 + $0x8] sm:$0xff] }
 0x137   : > { %2098 = vmatprep.subr.mxu1 %v589_v23  ;;  %v866_v35 = vpop.f32.mrf.mxu0 }
 0x138   : > { %2099 = vmatpush3.msra.mxu1 %v573_v58  ;;  %v3146_v51 = vadd.f32 %v3055_v50, %v866_v35 }
 0x139   : > { %2100 = vmatprep.subr.mxu1 %v588_v59  ;;  %v2424_v44 = vpop.f32.mrf.mxu0  ;;  %v679_v59 = vld [vmem:[%s3791_s3 + $0x28] sm:$0xff] }
 0x13a   : > { %2101 = vmatpush3.msra.mxu1 %v572_v48  ;;  %v3153_v52 = vadd.f32 %v2424_v44, %v3055_v50 }
 0x13b   : > { %2102 = vmatprep.subr.mxu1 %v587_v32  ;;  %v869_v54 = vpop.f32.mrf.mxu0  ;;  %v678_v32 = vld [vmem:[%s3791_s3 + $0x20] sm:$0xff] }
 0x13c   : > { %2103 = vmatpush3.msra.mxu1 %v571_v45  ;;  %v3160_v36 = vadd.f32 %v3055_v50, %v869_v54 }
 0x13d   : > { %668 = vmatmul.mubr.f32.vlgmr.msra.gmra.mxu1 %v2746_v20  ;;  %2370 = vmatprep.subr.mxu1 %v2747_v29  ;;  %v2427_v25 = vpop.f32.mrf.mxu0 }
 0x13e   : > { %2371 = vmatpush3.msra.mxu1 %v689_v53  ;;  %v3167_v56 = vadd.f32 %v2427_v25, %v3055_v50  ;;  %2402 = vmatprep.mubr.msk.f32.mxu1 %vm2748_vm1, %v2747_v29 }
 0x13f   : > { %2372 = vmatprep.subr.mxu1 %v2747_v29  ;;  %v882_v33 = vpop.f32.mrf.mxu0 }
 0x140   : > { %2373 = vmatpush3.msra.mxu1 %v688_v1  ;;  %v3174_v23 = vadd.f32 %v3055_v50, %v882_v33  ;;  %v676_v1 = vld [vmem:[%s3791_s3 + $0x10] sm:$0xff] }
 0x141   : > { %2374 = vmatprep.subr.mxu1 %v2747_v29  ;;  %v2428_v47 = vpop.f32.mrf.mxu0 }
 0x142   : > { %2375 = vmatpush3.msra.mxu1 %v687_v3  ;;  %v3181_v58 = vadd.f32 %v2428_v47, %v3055_v50 }
 0x143   : > { %2376 = vmatprep.subr.mxu1 %v2747_v29  ;;  %v885_v42 = vpop.f32.mrf.mxu0 }
 0x144   : > { %2377 = vmatpush3.msra.mxu1 %v686_v46  ;;  %v3188_v26 = vadd.f32 %v3055_v50, %v885_v42 }
 0x145   : > { %2378 = vmatprep.subr.mxu1 %v2747_v29  ;;  %v2431_v48 = vpop.f32.mrf.mxu0 }
 0x146   : > { %2379 = vmatpush3.msra.mxu1 %v685_v37  ;;  %v3195_v40 = vadd.f32 %v2431_v48, %v3055_v50 }
 0x147   : > { %2380 = vmatprep.subr.mxu1 %v2747_v29  ;;  %v898_v45 = vpop.f32.mrf.mxu0 }
 0x148   : > { %2381 = vmatpush3.msra.mxu1 %v684_v28  ;;  %v3202_v53 = vadd.f32 %v3055_v50, %v898_v45  ;;  %v2682_v45 = vld [vmem:[%s3789_s1 + $0x2c] ss:$16 sps:$4 sm:$0xff]  }
 0x149   : > { %2382 = vmatprep.subr.mxu1 %v2747_v29  ;;  %v2432_v0 = vpop.f32.mrf.mxu0  ;;  %2547 = vmatprep.subr.bf16.mxu0 %v2682_v45 }
 0x14a   : > { %2383 = vmatpush3.msra.mxu1 %v683_v41  ;;  %v3209_v27 = vadd.f32 %v2432_v0, %v3055_v50  ;;  %2548 = vmatpush3.bf16.msra.mxu0 %v2682_v45  ;;  %v1060_v45 = vld [vmem:[%s3791_s3 + $0xe0] sm:$0xff] }
 0x14b   : > { %2384 = vmatprep.subr.mxu1 %v2747_v29  ;;  %v901_v3 = vpop.f32.mrf.mxu0 }
 0x14c   : > { %2385 = vmatpush3.msra.mxu1 %v682_v49  ;;  %v3216_v46 = vadd.f32 %v3055_v50, %v901_v3 }
 0x14d   : > { %2386 = vmatprep.subr.mxu1 %v2747_v29  ;;  %v2435_v35 = vpop.f32.mrf.mxu0 }
 0x14e   : > { %2387 = vmatpush3.msra.mxu1 %v681_v39  ;;  %v3220_v37 = vadd.f32 %v2435_v35, %v3055_v50 }
 0x14f   : > { %2388 = vmatprep.subr.mxu1 %v2747_v29  ;;  %v914_v44 = vpop.f32.mrf.mxu0 }
 0x150   : > { %2389 = vmatpush3.msra.mxu1 %v680_v31  ;;  %v3224_v28 = vadd.f32 %v3055_v50, %v914_v44  ;;  %v971_v0 = vmax.f32 %v3220_v37, 0.0  ;;  %v968_v37 = vmax.f32 %v3209_v27, 0.0  ;;  %v967_v44 = vmax.f32 %v3195_v40, 0.0 }
 0x151   : > { %2390 = vmatprep.subr.mxu1 %v2747_v29  ;;  %v2436_v54 = vpop.f32.mrf.mxu0  ;;  %v965_v27 = vmax.f32 %v3202_v53, 0.0  ;;  %v964_v40 = vmax.f32 %v3181_v58, 0.0  ;;  %v962_v53 = vmax.f32 %v3188_v26, 0.0  ;;  %v961_v58 = vmax.f32 %v3174_v23, 0.0 }
 0x152   : > { %2391 = vmatpush3.msra.mxu1 %v679_v59  ;;  %v3227_v41 = vadd.f32 %v2436_v54, %v3055_v50 }
 0x153   : > { %2392 = vmatprep.subr.mxu1 %v2747_v29  ;;  %v917_v25 = vpop.f32.mrf.mxu0 }
 0x154   : > { %2393 = vmatpush3.msra.mxu1 %v678_v32  ;;  %v3230_v49 = vadd.f32 %v3055_v50, %v917_v25  ;;  %v674_v32 = vld [vmem:[%s3791_s3] sm:$0xff] }
 0x155   : > { %2394 = vmatprep.subr.mxu1 %v2747_v29  ;;  %v2439_v33 = vpop.f32.mrf.mxu0 }
 0x156   : > { %2395 = vmatpush3.msra.mxu1 %v677_v24  ;;  %v939_v39 = vadd.f32 %v2439_v33, %v3055_v50  ;;  %v2683_v24 = vld [vmem:[%s3789_s1 + $0xc] ss:$16 sps:$4 sm:$0xff]   ;;  %v970_v3 = vmax.f32 %v3230_v49, 0.0 }
 0x157   : > { %2396 = vmatprep.subr.mxu1 %v2747_v29  ;;  %v930_v47 = vpop.f32.mrf.mxu0  ;;  %2549 = vmatprep.subr.bf16.mxu0 %v2683_v24 }
 0x158   : > { %2397 = vmatpush3.msra.mxu1 %v676_v1  ;;  %v931_v31 = vadd.f32 %v3055_v50, %v930_v47  ;;  %2550 = vmatpush3.bf16.msra.mxu0 %v2683_v24  ;;  %v955_v1 = vmax.f32 %v3111_v61, 0.0  ;;  %v952_v61 = vmax.f32 %v3105_v34, 0.0  ;;  %v949_v34 = vmax.f32 %v3098_v57, 0.0 }
 0x159   : > { %2398 = vmatprep.subr.mxu1 %v2747_v29  ;;  %v2440_v42 = vpop.f32.mrf.mxu0  ;;  %v946_v57 = vmax.f32 %v3084_v38, 0.0 }
 0x15a   : > { %2399 = vmatpush3.msra.mxu1 %v675_v21  ;;  %v942_v59 = vadd.f32 %v2440_v42, %v3055_v50  ;;  %v969_v21 = vmax.f32 %v3224_v28, 0.0  ;;  %v966_v28 = vmax.f32 %v3216_v46, 0.0  ;;  %v963_v46 = vmax.f32 %v3167_v56, 0.0  ;;  %v1062_v42 = vld [vmem:[%s3791_s3 + $0xf0] sm:$0xff] }
 0x15b   : > { %2400 = vmatprep.subr.mxu1 %v2747_v29  ;;  %2552 = vmatmul.mubr.msk.bf16.vlgmr.msra.gmra.mxu0 %vm361_vm0, %v2847_v4 }
 0x15c   : > { %v976_v48 = vmax.f32 %v942_v59, 0.0  ;;  %2401 = vmatpush3.msra.mxu1 %v674_v32  ;;  %2555 = vmatprep.mubr.msk.bf16.mxu0 %vm361_vm0, %v2852_v5  ;;  %v933_v5 = vpop.f32.mrf.mxu0 }
 0x15e   : > { %2142 = vmatprep.subr.mxu1 %v976_v48  ;;  %v1061_v48 = vld [vmem:[%s3791_s3 + $0xe8] sm:$0xff] }
 0x163   : > { %2556 = vmatmul.mubr.msk.bf16.gmra.mxu0 %vm361_vm0, %v2859_v6 }
 0x164   : > { %2559 = vmatprep.mubr.msk.bf16.mxu0 %vm361_vm0, %v2862_v7 }
 0x16b   : > { %2560 = vmatmul.mubr.msk.bf16.gmra.mxu0 %vm361_vm0, %v2869_v8  ;;  %v3276_v8 = vpop.f32.mrf.mxu0 }
 0x16c   : > { %2563 = vmatprep.mubr.msk.bf16.mxu0 %vm361_vm0, %v2872_v9  ;;  %v934_v9 = vadd.f32 %v3055_v50, %v933_v5 }
 0x173   : > { %2564 = vmatmul.mubr.msk.bf16.gmra.mxu0 %vm361_vm0, %v2879_v10 }
 0x174   : > { %2567 = vmatprep.mubr.msk.bf16.mxu0 %vm361_vm0, %v2882_v11  ;;  %v960_v11 = vmax.f32 %v3153_v52, 0.0  ;;  %v972_v52 = vmax.f32 %v3227_v41, 0.0 }
 0x17b   : > { %2568 = vmatmul.mubr.msk.bf16.gmra.mxu0 %vm361_vm0, %v2889_v12  ;;  %v975_v12 = vmax.f32 %v939_v39, 0.0 }
 0x17c   : > { %2571 = vmatprep.mubr.msk.bf16.mxu0 %vm361_vm0, %v2892_v13  ;;  %v959_v13 = vmax.f32 %v3139_v30, 0.0  ;;  %v956_v30 = vmax.f32 %v3125_v43, 0.0  ;;  %v953_v43 = vmax.f32 %v3117_v63, 0.0  ;;  %v950_v63 = vmax.f32 %v3108_v60, 0.0 }
 0x17d   : > { %v947_v60 = vmax.f32 %v3063_v62, 0.0 }
 0x183   : > { %2572 = vmatmul.mubr.msk.bf16.gmra.mxu0 %vm361_vm0, %v2899_v14  ;;  %v3282_v14 = vpop.f32.mrf.mxu0 }
 0x184   : > { %2575 = vmatprep.mubr.msk.bf16.mxu0 %vm361_vm0, %v2902_v15  ;;  %v974_v15 = vmax.f32 %v934_v9, 0.0  ;;  %v1057_v9 = vld [vmem:[%s3791_s3 + $0xc8] sm:$0xff] }
 0x185   : > { %v3286_v50 = vpop.f32.mrf.mxu0 }
 0x18b   : > { %2576 = vmatmul.mubr.msk.bf16.gmra.mxu0 %vm361_vm0, %v2909_v16  ;;  %v958_v16 = vmax.f32 %v3160_v36, 0.0  ;;  %v3292_v36 = vpop.f32.mrf.mxu0 }
 0x18c   : > { %2579 = vmatprep.mubr.msk.bf16.mxu0 %vm361_vm0, %v2912_v17  ;;  %v973_v17 = vmax.f32 %v931_v31, 0.0  ;;  %v1063_v31 = vld [vmem:[%s3791_s3 + $0xf8] sm:$0xff] }
 0x18d   : > { %v3298_v35 = vpop.f32.mrf.mxu0 }
 0x18f   : > { %v3304_v54 = vpop.f32.mrf.mxu0 }
 0x191   : > { %v3310_v41 = vpop.f32.mrf.mxu0 }
 0x193   : > { %2580 = vmatmul.mubr.msk.bf16.gmra.mxu0 %vm361_vm0, %v2919_v18  ;;  %v957_v18 = vmax.f32 %v3146_v51, 0.0  ;;  %v954_v51 = vmax.f32 %v3132_v19, 0.0  ;;  %v951_v19 = vmax.f32 %v3091_v55, 0.0  ;;  %v948_v55 = vmax.f32 %v3077_v22, 0.0  ;;  %v3316_v25 = vpop.f32.mrf.mxu0 }
 0x194   : > { %v945_v22 = vmax.f32 %v3070_v2, 0.0 }
 0x195   : > { %v3322_v49 = vpop.f32.mrf.mxu0 }
 0x197   : > { %v3326_v62 = vpop.f32.mrf.mxu0 }
 0x199   : > { %v3330_v38 = vpop.f32.mrf.mxu0 }
 0x19b   : > { %v3332_v56 = vpop.f32.mrf.mxu0 }
 0x19d   : > { %v3334_v23 = vpop.f32.mrf.mxu0 }
 0x19f   : > { %v3336_v2 = vpop.f32.mrf.mxu0 }
 0x1a1   : > { %v3338_v26 = vpop.f32.mrf.mxu0 }
 0x1a3   : > { %v3340_v33 = vpop.f32.mrf.mxu0 }
 0x1a5   : > { %v3342_v39 = vpop.f32.mrf.mxu0 }
 0x1a7   : > { %v3344_v47 = vpop.f32.mrf.mxu0 }
 0x1a9   : > { %v3352_v59 = vpop.f32.mrf.mxu0 }
 0x1ab   : > { %v3358_v32 = vpop.f32.mrf.mxu0 }
 0x1ad   : > { %v3364_v24 = vpop.f32.mrf.mxu0 }
 0x1af   : > { %v3370_v5 = vpop.f32.mrf.mxu0 }
 0x1fd   : > { %v2104_v4 = vpop.f32.mrf.mxu1 }
 0x1ff   : > { %v2105_v6 = vpop.f32.mrf.mxu1 }
 0x200   : > { %v2106_v7 = vadd.f32 %v2105_v6, %v2104_v4  ;;  %v1059_v4 = vld [vmem:[%s3791_s3 + $0xd8] sm:$0xff]  ;;  %v1058_v6 = vld [vmem:[%s3791_s3 + $0xd0] sm:$0xff] }
 0x202   : > { %v673_v10 = vmul.f32 0.00390625, %v2106_v7  ;;  %v3376_v7 = vpop.f32.mrf.mxu0 }
 0x204   : > { %2403 = vmatmul.mubr.f32.vlgmr.msra.gmra.mxu1 %v673_v10  ;;  %v3382_v10 = vpop.f32.mrf.mxu0 }
 0x205   : > { %2143 = vmatpush3.msra.mxu1 %v960_v11  ;;  %1041 = vmatprep.mubr.f32.mxu1 %v2746_v20  ;;  %v1056_v11 = vld [vmem:[%s3791_s3 + $0xc0] sm:$0xff] }
 0x206   : > { %2144 = vmatprep.subr.mxu1 %v975_v12  ;;  %v3388_v12 = vpop.f32.mrf.mxu0 }
 0x207   : > { %2145 = vmatpush3.msra.mxu1 %v959_v13  ;;  %v1055_v13 = vld [vmem:[%s3791_s3 + $0xb8] sm:$0xff] }
 0x208   : > { %2146 = vmatprep.subr.mxu1 %v974_v15  ;;  %v3394_v15 = vpop.f32.mrf.mxu0 }
 0x209   : > { %2147 = vmatpush3.msra.mxu1 %v958_v16  ;;  %v1054_v16 = vld [vmem:[%s3791_s3 + $0xb0] sm:$0xff] }
 0x20a   : > { %2148 = vmatprep.subr.mxu1 %v973_v17  ;;  %v2507_v17 = vpop.f32.mrf.mxu0 }
 0x20b   : > { %2149 = vmatpush3.msra.mxu1 %v957_v18  ;;  %v1053_v18 = vld [vmem:[%s3791_s3 + $0xa8] sm:$0xff] }
 0x20c   : > { %2150 = vmatprep.subr.mxu1 %v972_v52  ;;  %v1291_v52 = vpop.f32.mrf.mxu0 }
 0x20d   : > { %2151 = vmatpush3.msra.mxu1 %v956_v30  ;;  %v1052_v30 = vld [vmem:[%s3791_s3 + $0xa0] sm:$0xff] }
 0x20e   : > { %2152 = vmatprep.subr.mxu1 %v971_v0  ;;  %v2510_v0 = vpop.f32.mrf.mxu0 }
 0x20f   : > { %2153 = vmatpush3.msra.mxu1 %v955_v1  ;;  %v1051_v1 = vld [vmem:[%s3791_s3 + $0x98] sm:$0xff] }
 0x210   : > { %2154 = vmatprep.subr.mxu1 %v970_v3  ;;  %v1304_v3 = vpop.f32.mrf.mxu0 }
 0x211   : > { %2155 = vmatpush3.msra.mxu1 %v954_v51  ;;  %v1050_v51 = vld [vmem:[%s3791_s3 + $0x90] sm:$0xff] }
 0x212   : > { %2156 = vmatprep.subr.mxu1 %v969_v21  ;;  %v3419_v21 = vld [vmem:[%s3790_s2 + $0x2] ss:$0 sm:$0xff] }
 0x213   : > { %2157 = vmatpush3.msra.mxu1 %v953_v43  ;;  %v2511_v43 = vpop.f32.mrf.mxu0 }
 0x214   : > { %2158 = vmatprep.subr.mxu1 %v968_v37  ;;  %v1316_v37 = vadd.f32 %v2511_v43, %v3419_v21 }
 0x215   : > { %2159 = vmatpush3.msra.mxu1 %v952_v61  ;;  %v1049_v61 = vld [vmem:[%s3791_s3 + $0x88] sm:$0xff] }
 0x216   : > { %2160 = vmatprep.subr.mxu1 %v967_v44  ;;  %v1350_v44 = vmax.f32 %v1316_v37, 0.0 }
 0x217   : > { %2161 = vmatpush3.msra.mxu1 %v951_v19  ;;  %v1048_v19 = vld [vmem:[%s3791_s3 + $0x80] sm:$0xff] }
 0x218   : > { %2162 = vmatprep.subr.mxu1 %v966_v28 }
 0x219   : > { %2163 = vmatpush3.msra.mxu1 %v950_v63 }
 0x21a   : > { %2164 = vmatprep.subr.mxu1 %v965_v27 }
 0x21b   : > { %2165 = vmatpush3.msra.mxu1 %v949_v34  ;;  %v1252_v34 = vadd.f32 %v3338_v26, %v3419_v21  ;;  %v1305_v26 = vadd.f32 %v3419_v21, %v1304_v3 }
 0x21c   : > { %2166 = vmatprep.subr.mxu1 %v964_v40  ;;  %v1307_v40 = vpop.f32.mrf.mxu0 }
 0x21d   : > { %2167 = vmatpush3.msra.mxu1 %v948_v55 }
 0x21e   : > { %2168 = vmatprep.subr.mxu1 %v963_v46  ;;  %v1313_v46 = vadd.f32 %v2510_v0, %v3419_v21  ;;  %v1292_v0 = vadd.f32 %v3419_v21, %v1291_v52  ;;  %v1284_v52 = vadd.f32 %v3376_v7, %v3419_v21 }
 0x21f   : > { %2169 = vmatpush3.msra.mxu1 %v947_v60 }
 0x220   : > { %2170 = vmatprep.subr.mxu1 %v962_v53  ;;  %v1249_v53 = vadd.f32 %v3334_v23, %v3419_v21  ;;  %v1344_v37 = vmax.f32 %v1292_v0, 0.0  ;;  %v1342_v7 = vmax.f32 %v1284_v52, 0.0  ;;  %v1437_v0 = vld [vmem:[%s3791_s3 + $0x178] sm:$0xff] }
 0x221   : > { %2171 = vmatpush3.msra.mxu1 %v946_v57  ;;  %v3438_v57 = vpop.f32.mrf.mxu0  ;;  %v1433_v52 = vld [vmem:[%s3791_s3 + $0x158] sm:$0xff] }
 0x222   : > { %2172 = vmatprep.subr.mxu1 %v961_v58  ;;  %v1308_v58 = vadd.f32 %v3419_v21, %v1307_v40  ;;  %v1273_v40 = vadd.f32 %v3419_v21, %v3370_v5  ;;  %v1265_v5 = vadd.f32 %v3342_v39, %v3419_v21 }
 0x223   : > { %2173 = vmatpush3.msra.mxu1 %v945_v22  ;;  %v3447_v23 = vpop.f32.mrf.mxu0 }
 0x224   : > { %1042 = vmatmul.mubr.f32.vlgmr.msra.gmra.mxu1 %v2746_v20  ;;  %2441 = vmatprep.subr.mxu1 %v2747_v29  ;;  %v1337_v39 = vmax.f32 %v1265_v5, 0.0 }
 0x225   : > { %2473 = vmatprep.mubr.msk.f32.mxu1 %vm2748_vm1, %v2747_v29  ;;  %2442 = vmatpush3.msra.mxu1 %v1063_v31  ;;  %v1334_v31 = vmax.f32 %v1252_v34, 0.0  ;;  %v1212_v34 = vadd.f32 %v3419_v21, %v3316_v25  ;;  %v1204_v25 = vadd.f32 %v3286_v50, %v3419_v21 }
 0x226   : > { %2443 = vmatprep.subr.mxu1 %v2747_v29 }
 0x227   : > { %2444 = vmatpush3.msra.mxu1 %v1062_v42  ;;  %v1244_v42 = vadd.f32 %v3419_v21, %v3340_v33  ;;  %v1236_v33 = vadd.f32 %v3330_v38, %v3419_v21  ;;  %v1228_v38 = vadd.f32 %v3419_v21, %v3332_v56  ;;  %v1220_v56 = vadd.f32 %v3310_v41, %v3419_v21 }
 0x228   : > { %2445 = vmatprep.subr.mxu1 %v2747_v29  ;;  %v1322_v50 = vmax.f32 %v1204_v25, 0.0  ;;  %v1424_v25 = vld [vmem:[%s3791_s3 + $0x110] sm:$0xff] }
 0x229   : > { %2446 = vmatpush3.msra.mxu1 %v1061_v48  ;;  %v1349_v48 = vmax.f32 %v1313_v46, 0.0  ;;  %v1326_v41 = vmax.f32 %v1220_v56, 0.0  ;;  %v1432_v56 = vld [vmem:[%s3791_s3 + $0x150] sm:$0xff] }
 0x22a   : > { %2447 = vmatprep.subr.mxu1 %v2747_v29 }
 0x22b   : > { %2448 = vmatpush3.msra.mxu1 %v1060_v45  ;;  %v1333_v45 = vmax.f32 %v1249_v53, 0.0  ;;  %v1324_v53 = vmax.f32 %v1212_v34, 0.0 }
 0x22c   : > { %2449 = vmatprep.subr.mxu1 %v2747_v29 }
 0x22d   : > { %2450 = vmatpush3.msra.mxu1 %v1059_v4  ;;  %v1241_v4 = vadd.f32 %v3419_v21, %v3336_v2  ;;  %v1233_v2 = vadd.f32 %v3322_v49, %v3419_v21  ;;  %v1225_v49 = vadd.f32 %v3419_v21, %v3326_v62  ;;  %v1217_v62 = vadd.f32 %v3298_v35, %v3419_v21 }
 0x22e   : > { %2451 = vmatprep.subr.mxu1 %v2747_v29 }
 0x22f   : > { %2452 = vmatpush3.msra.mxu1 %v1058_v6  ;;  %v1300_v6 = vadd.f32 %v2507_v17, %v3419_v21  ;;  %v1325_v35 = vmax.f32 %v1217_v62, 0.0  ;;  %v1430_v62 = vld [vmem:[%s3791_s3 + $0x140] sm:$0xff] }
 0x230   : > { %2453 = vmatprep.subr.mxu1 %v2747_v29 }
 0x231   : > { %2454 = vmatpush3.msra.mxu1 %v1057_v9  ;;  %v1348_v9 = vmax.f32 %v1308_v58, 0.0  ;;  %v1346_v17 = vmax.f32 %v1300_v6, 0.0  ;;  %v1339_v58 = vmax.f32 %v1273_v40, 0.0 }
 0x232   : > { %2455 = vmatprep.subr.mxu1 %v2747_v29 }
 0x233   : > { %2456 = vmatpush3.msra.mxu1 %v1056_v11  ;;  %v1332_v11 = vmax.f32 %v1244_v42, 0.0  ;;  %v1260_v42 = vadd.f32 %v3419_v21, %v3358_v32 }
 0x234   : > { %2457 = vmatprep.subr.mxu1 %v2747_v29 }
 0x235   : > { %2458 = vmatpush3.msra.mxu1 %v1055_v13  ;;  %v1297_v13 = vadd.f32 %v3388_v12, %v3419_v21  ;;  %v1289_v12 = vadd.f32 %v3419_v21, %v3394_v15  ;;  %v1281_v15 = vadd.f32 %v3364_v24, %v3419_v21  ;;  %v1336_v6 = vmax.f32 %v1260_v42, 0.0  ;;  %v257_v42 = vld [vmem:[%s3792_s4] sm:$0x1] }
 0x236   : > { %2459 = vmatprep.subr.mxu1 %v2747_v29 }
 0x237   : > { %2460 = vmatpush3.msra.mxu1 %v1054_v16  ;;  %v1347_v16 = vmax.f32 %v1305_v26, 0.0  ;;  %v1345_v3 = vmax.f32 %v1297_v13, 0.0  ;;  %v1341_v24 = vmax.f32 %v1281_v15, 0.0  ;;  %v1257_v26 = vadd.f32 %v3419_v21, %v3344_v47  ;;  %v1431_v15 = vld [vmem:[%s3791_s3 + $0x148] sm:$0xff] }
 0x238   : > { %2461 = vmatprep.subr.mxu1 %v2747_v29 }
 0x239   : > { %2462 = vmatpush3.msra.mxu1 %v1053_v18  ;;  %v1331_v18 = vmax.f32 %v1241_v4, 0.0 }
 0x23a   : > { %2463 = vmatprep.subr.mxu1 %v2747_v29 }
 0x23b   : > { %2464 = vmatpush3.msra.mxu1 %v1052_v30  ;;  %v3456_v30 = vpop.f32.mrf.mxu0 }
 0x23c   : > { %2465 = vmatprep.subr.mxu1 %v2747_v29 }
 0x23d   : > { %2466 = vmatpush3.msra.mxu1 %v1051_v1  ;;  %v1330_v1 = vmax.f32 %v1236_v33, 0.0  ;;  %v3465_v43 = vpop.f32.mrf.mxu0 }
 0x23e   : > { %2467 = vmatprep.subr.mxu1 %v2747_v29 }
 0x23f   : > { %2468 = vmatpush3.msra.mxu1 %v1050_v51  ;;  %v1329_v51 = vmax.f32 %v1233_v2, 0.0 }
 0x240   : > { %2469 = vmatprep.subr.mxu1 %v2747_v29 }
 0x241   : > { %2470 = vmatpush3.msra.mxu1 %v1049_v61  ;;  %v1328_v61 = vmax.f32 %v1228_v38, 0.0 }
 0x242   : > { %2471 = vmatprep.subr.mxu1 %v2747_v29 }
 0x243   : > { %2472 = vmatpush3.msra.mxu1 %v1048_v19  ;;  %v1327_v19 = vmax.f32 %v1225_v49, 0.0 }
 0x244   : > { %2212 = vmatprep.subr.mxu1 %v1350_v44  ;;  %v1343_v44 = vmax.f32 %v1289_v12, 0.0 }
 0x2c4   : > { %v3431_v28 = vpop.f32.mrf.mxu1 }
 0x2c6   : > { %v2404_v63 = vpop.f32.mrf.mxu1 }
 0x2c7   : > { %v3475_v63 = vpop.f32.mrf.mxu0 }
 0x2c9   : > { %v3485_v46 = vpop.f32.mrf.mxu0 }
 0x2e4   : > { %v2174_v27 = vpop.f32.mrf.mxu1 }
 0x2e6   : > { %v2175_v55 = vpop.f32.mrf.mxu1 }
 0x2e7   : > { %v2176_v60 = vadd.f32 %v2175_v55, %v2174_v27  ;;  %v1276_v27 = vadd.f32 %v3419_v21, %v3382_v10  ;;  %v1209_v55 = vadd.f32 %v3419_v21, %v3304_v54  ;;  %v1268_v10 = vadd.f32 %v3352_v59, %v3419_v21 }
 0x2e8   : > { %v1201_v54 = vadd.f32 %v3276_v8, %v3419_v21 }
 0x2e9   : > { %v1047_v22 = vmul.f32 0.00390625, %v2176_v60  ;;  %v1340_v60 = vmax.f32 %v1276_v27, 0.0  ;;  %v1338_v59 = vmax.f32 %v1268_v10, 0.0  ;;  %v1425_v10 = vld [vmem:[%s3791_s3 + $0x118] sm:$0xff] }
 0x2ea   : > { %v1321_v8 = vmax.f32 %v1201_v54, 0.0  ;;  %v1423_v54 = vld [vmem:[%s3791_s3 + $0x108] sm:$0xff] }
 0x2eb   : > { %2474 = vmatmul.mubr.f32.vlgmr.msra.gmra.mxu1 %v1047_v22  ;;  %v1323_v22 = vmax.f32 %v1209_v55, 0.0 }
 0x2ec   : > { %2213 = vmatpush3.msra.mxu1 %v1334_v31  ;;  %1415 = vmatprep.mubr.f32.mxu1 %v2746_v20  ;;  %v3495_v31 = vpop.f32.mrf.mxu0 }
 0x2ed   : > { %2214 = vmatprep.subr.mxu1 %v1349_v48  ;;  %v1196_v48 = vadd.f32 %v3419_v21, %v3292_v36 }
 0x2ee   : > { %2215 = vmatpush3.msra.mxu1 %v1333_v45  ;;  %v1193_v45 = vadd.f32 %v3419_v21, %v3282_v14  ;;  %v3505_v4 = vpop.f32.mrf.mxu0 }
 0x2ef   : > { %2216 = vmatprep.subr.mxu1 %v1348_v9  ;;  %v1320_v32 = vmax.f32 %v1196_v48, 0.0  ;;  %v1335_v9 = vmax.f32 %v1257_v26, 0.0 }
 0x2f0   : > { %2217 = vmatpush3.msra.mxu1 %v1332_v11  ;;  %v1319_v36 = vmax.f32 %v1193_v45, 0.0  ;;  %v3507_v33 = vpop.f32.mrf.mxu0 }
 0x2f1   : > { %2218 = vmatprep.subr.mxu1 %v1347_v16 }
 0x2f2   : > { %2219 = vmatpush3.msra.mxu1 %v1331_v18  ;;  %v3511_v14 = vpop.f32.mrf.mxu0 }
 0x2f3   : > { %2220 = vmatprep.subr.mxu1 %v1346_v17 }
 0x2f4   : > { %2221 = vmatpush3.msra.mxu1 %v1330_v1  ;;  %v3515_v47 = vpop.f32.mrf.mxu0  ;;  %v1436_v1 = vld [vmem:[%s3791_s3 + $0x170] sm:$0xff] }
 0x2f5   : > { %2222 = vmatprep.subr.mxu1 %v1345_v3  ;;  %v1435_v3 = vld [vmem:[%s3791_s3 + $0x168] sm:$0xff] }
 0x2f6   : > { %2223 = vmatpush3.msra.mxu1 %v1329_v51  ;;  %v3517_v21 = vpop.f32.mrf.mxu0  ;;  %v1434_v51 = vld [vmem:[%s3791_s3 + $0x160] sm:$0xff] }
 0x2f7   : > { %2224 = vmatprep.subr.mxu1 %v1344_v37 }
 0x2f8   : > { %2225 = vmatpush3.msra.mxu1 %v1328_v61  ;;  %v3519_v11 = vpop.f32.mrf.mxu0 }
 0x2f9   : > { %2226 = vmatprep.subr.mxu1 %v1343_v44 }
 0x2fa   : > { %2227 = vmatpush3.msra.mxu1 %v1327_v19  ;;  %v3521_v13 = vpop.f32.mrf.mxu0 }
 0x2fb   : > { %2228 = vmatprep.subr.mxu1 %v1342_v7  ;;  %v1429_v7 = vld [vmem:[%s3791_s3 + $0x138] sm:$0xff] }
 0x2fc   : > { %2229 = vmatpush3.msra.mxu1 %v1326_v41  ;;  %v3523_v16 = vpop.f32.mrf.mxu0  ;;  %v1428_v41 = vld [vmem:[%s3791_s3 + $0x130] sm:$0xff] }
 0x2fd   : > { %2230 = vmatprep.subr.mxu1 %v1341_v24  ;;  %v1427_v24 = vld [vmem:[%s3791_s3 + $0x128] sm:$0xff] }
 0x2fe   : > { %2231 = vmatpush3.msra.mxu1 %v1325_v35  ;;  %v3525_v2 = vpop.f32.mrf.mxu0  ;;  %v1426_v35 = vld [vmem:[%s3791_s3 + $0x120] sm:$0xff] }
 0x2ff   : > { %2232 = vmatprep.subr.mxu1 %v1340_v60 }
 0x300   : > { %2233 = vmatpush3.msra.mxu1 %v1324_v53  ;;  %v3527_v18 = vpop.f32.mrf.mxu0  ;;  %v3604_v53 = vld [vmem:[%s3790_s2 + $0x3] ss:$0 sm:$0xff] }
 0x301   : > { %2234 = vmatprep.subr.mxu1 %v1339_v58  ;;  %v1626_v45 = vadd.f32 %v3523_v16, %v3604_v53 }
 0x302   : > { %2235 = vmatpush3.msra.mxu1 %v1323_v22  ;;  %v3529_v17 = vpop.f32.mrf.mxu0 }
 0x303   : > { %2236 = vmatprep.subr.mxu1 %v1338_v59  ;;  %v1422_v59 = vld [vmem:[%s3791_s3 + $0x100] sm:$0xff] }
 0x304   : > { %2237 = vmatpush3.msra.mxu1 %v1322_v50  ;;  %v3537_v38 = vpop.f32.mrf.mxu0  ;;  %v760_v50 = vadd.f32 %v3431_v28, %v257_v42  ;;  %v1708_v28 = vmax.f32 %v1626_v45, 0.0  ;;  %v1639_v45 = vadd.f32 %v3527_v18, %v3604_v53  ;;  %v1631_v18 = vadd.f32 %v3604_v53, %v3529_v17  ;;  %v1808_v17 = vld [vmem:[%s3791_s3 + $0x1e0] sm:$0xff] }
 0x305   : > { %2238 = vmatprep.subr.mxu1 %v1337_v39 }
 0x306   : > { %2239 = vmatpush3.msra.mxu1 %v1321_v8  ;;  %v3543_v12 = vpop.f32.mrf.mxu0 }
 0x307   : > { %2240 = vmatprep.subr.mxu1 %v1336_v6 }
 0x308   : > { %2241 = vmatpush3.msra.mxu1 %v1320_v32  ;;  %v3549_v49 = vpop.f32.mrf.mxu0 }
 0x309   : > { %2242 = vmatprep.subr.mxu1 %v1335_v9 }
 0x30a   : > { %2243 = vmatpush3.msra.mxu1 %v1319_v36  ;;  %v3555_v37 = vpop.f32.mrf.mxu0 }
 0x30b   : > { %1416 = vmatmul.mubr.f32.vlgmr.msra.gmra.mxu1 %v2746_v20  ;;  %2512 = vmatprep.subr.mxu1 %v2747_v29 }
 0x30c   : > { %2544 = vmatprep.mubr.msk.f32.mxu1 %vm2748_vm1, %v2747_v29  ;;  %2513 = vmatpush3.msra.mxu1 %v1437_v0  ;;  %v3561_v61 = vpop.f32.mrf.mxu0  ;;  %v1623_v0 = vadd.f32 %v3519_v11, %v3604_v53 }
 0x30d   : > { %2514 = vmatprep.subr.mxu1 %v2747_v29 }
 0x30e   : > { %2515 = vmatpush3.msra.mxu1 %v1436_v1  ;;  %v3567_v44 = vpop.f32.mrf.mxu0  ;;  %v1707_v16 = vmax.f32 %v1623_v0, 0.0 }
 0x30f   : > { %2516 = vmatprep.subr.mxu1 %v2747_v29 }
 0x310   : > { %2517 = vmatpush3.msra.mxu1 %v1435_v3  ;;  %v3573_v19 = vpop.f32.mrf.mxu0 }
 0x311   : > { %2518 = vmatprep.subr.mxu1 %v2747_v29 }
 0x312   : > { %2519 = vmatpush3.msra.mxu1 %v1434_v51  ;;  %v3579_v27 = vpop.f32.mrf.mxu0  ;;  %v1618_v51 = vadd.f32 %v3604_v53, %v3525_v2  ;;  %v1671_v2 = vadd.f32 %v3573_v19, %v3604_v53 }
 0x313   : > { %2520 = vmatprep.subr.mxu1 %v2747_v29  ;;  %v1663_v19 = vadd.f32 %v3604_v53, %v3579_v27 }
 0x314   : > { %2521 = vmatpush3.msra.mxu1 %v1433_v52  ;;  %v2578_v34 = vpop.f32.mrf.mxu0 }
 0x315   : > { %2522 = vmatprep.subr.mxu1 %v2747_v29  ;;  %v1674_v11 = vadd.f32 %v2578_v34, %v3604_v53  ;;  %v1717_v27 = vmax.f32 %v1663_v19, 0.0 }
 0x316   : > { %2523 = vmatpush3.msra.mxu1 %v1432_v56  ;;  %v1665_v40 = vpop.f32.mrf.mxu0 }
 0x317   : > { %2524 = vmatprep.subr.mxu1 %v2747_v29  ;;  %v1666_v34 = vadd.f32 %v3604_v53, %v1665_v40 }
 0x318   : > { %2525 = vmatpush3.msra.mxu1 %v1431_v15  ;;  %v2581_v55 = vpop.f32.mrf.mxu0  ;;  %v1615_v15 = vadd.f32 %v3604_v53, %v3521_v13  ;;  %v1607_v13 = vadd.f32 %v3507_v33, %v3604_v53  ;;  %v1599_v33 = vadd.f32 %v3604_v53, %v3511_v14 }
 0x319   : > { %2526 = vmatprep.subr.mxu1 %v2747_v29  ;;  %v1687_v9 = vadd.f32 %v2581_v55, %v3604_v53  ;;  %v1720_v55 = vmax.f32 %v1674_v11, 0.0  ;;  %v1718_v40 = vmax.f32 %v1666_v34, 0.0  ;;  %v1801_v11 = vld [vmem:[%s3791_s3 + $0x1a8] sm:$0xff] }
 0x31a   : > { %2527 = vmatpush3.msra.mxu1 %v1430_v62  ;;  %v1678_v60 = vpop.f32.mrf.mxu0  ;;  %v1701_v14 = vmax.f32 %v1599_v33, 0.0 }
 0x31b   : > { %2528 = vmatprep.subr.mxu1 %v2747_v29  ;;  %v1723_v52 = vmax.f32 %v1687_v9, 0.0  ;;  %v1679_v56 = vadd.f32 %v3604_v53, %v1678_v60  ;;  %v1719_v60 = vmax.f32 %v1671_v2, 0.0  ;;  %v1797_v2 = vld [vmem:[%s3791_s3 + $0x188] sm:$0xff] }
 0x31c   : > { %2529 = vmatpush3.msra.mxu1 %v1429_v7  ;;  %v2582_v5 = vpop.f32.mrf.mxu0  ;;  %v1610_v7 = vadd.f32 %v3515_v47, %v3604_v53  ;;  %v1602_v47 = vadd.f32 %v3604_v53, %v3517_v21 }
 0x31d   : > { %2530 = vmatprep.subr.mxu1 %v2747_v29  ;;  %v1690_v58 = vadd.f32 %v2582_v5, %v3604_v53  ;;  %v1658_v5 = vadd.f32 %v3561_v61, %v3604_v53  ;;  %v1650_v61 = vadd.f32 %v3604_v53, %v3567_v44 }
 0x31e   : > { %2531 = vmatpush3.msra.mxu1 %v1428_v41  ;;  %v1681_v6 = vpop.f32.mrf.mxu0  ;;  %v1706_v41 = vmax.f32 %v1618_v51, 0.0  ;;  %v1702_v21 = vmax.f32 %v1602_v47, 0.0  ;;  %v1806_v51 = vld [vmem:[%s3791_s3 + $0x1d0] sm:$0xff] }
 0x31f   : > { %2532 = vmatprep.subr.mxu1 %v2747_v29  ;;  %v1724_v22 = vmax.f32 %v1690_v58, 0.0  ;;  %v1682_v1 = vadd.f32 %v3604_v53, %v1681_v6  ;;  %v1594_v58 = vadd.f32 %v3495_v31, %v3604_v53  ;;  %v1586_v31 = vadd.f32 %v3604_v53, %v3505_v4 }
 0x320   : > { %2533 = vmatpush3.msra.mxu1 %v1427_v24  ;;  %v1721_v24 = vmax.f32 %v1679_v56, 0.0  ;;  %v1714_v44 = vmax.f32 %v1650_v61, 0.0  ;;  %v1575_v6 = vadd.f32 %v3438_v57, %v3604_v53  ;;  %v1567_v57 = vadd.f32 %v3604_v53, %v3447_v23  ;;  %v1811_v23 = vld [vmem:[%s3791_s3 + $0x1f8] sm:$0xff]  ;;  %v1804_v56 = vld [vmem:[%s3791_s3 + $0x1c0] sm:$0xff] }
 0x321   : > { %2534 = vmatprep.subr.mxu1 %v2747_v29  ;;  %v1722_v62 = vmax.f32 %v1682_v1, 0.0  ;;  %v1700_v42 = vmax.f32 %v1594_v58, 0.0  ;;  %v1698_v4 = vmax.f32 %v1586_v31, 0.0 }
 0x322   : > { %2535 = vmatpush3.msra.mxu1 %v1426_v35  ;;  %v1705_v35 = vmax.f32 %v1615_v15, 0.0  ;;  %v1695_v0 = vmax.f32 %v1575_v6, 0.0  ;;  %v1802_v15 = vld [vmem:[%s3791_s3 + $0x1b0] sm:$0xff] }
 0x323   : > { %2536 = vmatprep.subr.mxu1 %v2747_v29 }
 0x324   : > { %2537 = vmatpush3.msra.mxu1 %v1425_v10  ;;  %v1704_v10 = vmax.f32 %v1610_v7, 0.0  ;;  %v1799_v7 = vld [vmem:[%s3791_s3 + $0x198] sm:$0xff] }
 0x325   : > { %2538 = vmatprep.subr.mxu1 %v2747_v29 }
 0x326   : > { %2539 = vmatpush3.msra.mxu1 %v1424_v25  ;;  %v1703_v25 = vmax.f32 %v1607_v13, 0.0 }
 0x327   : > { %2540 = vmatprep.subr.mxu1 %v2747_v29 }
 0x328   : > { %2541 = vmatpush3.msra.mxu1 %v1423_v54  ;;  %v1655_v54 = vadd.f32 %v3549_v49, %v3604_v53  ;;  %v1647_v49 = vadd.f32 %v3604_v53, %v3555_v37 }
 0x329   : > { %2542 = vmatprep.subr.mxu1 %v2747_v29 }
 0x32a   : > { %2543 = vmatpush3.msra.mxu1 %v1422_v59  ;;  %v1716_v59 = vmax.f32 %v1658_v5, 0.0  ;;  %v1713_v37 = vmax.f32 %v1647_v49, 0.0 }
 0x32b   : > { %2282 = vmatprep.subr.mxu1 %v1724_v22  ;;  %v1591_v22 = vadd.f32 %v3475_v63, %v3604_v53  ;;  %v1583_v63 = vadd.f32 %v3604_v53, %v3485_v46 }
 0x32d   : > { %v1697_v46 = vmax.f32 %v1583_v63, 0.0 }
 0x3ab   : > { %v1130_v48 = vpop.f32.mrf.mxu1 }
 0x3ac   : > { %v3620_v39 = vadd.f32 %v1130_v48, %v760_v50  ;;  %v1715_v50 = vmax.f32 %v1655_v54, 0.0  ;;  %v1699_v48 = vmax.f32 %v1591_v22, 0.0 }
 0x3ad   : > { %v2475_v26 = vpop.f32.mrf.mxu1 }
 0x3ae   : > { %v1642_v26 = vadd.f32 %v3537_v38, %v3604_v53  ;;  %v1634_v38 = vadd.f32 %v3604_v53, %v3543_v12  ;;  %v1709_v12 = vmax.f32 %v1631_v18, 0.0 }
 0x3b0   : > { %v1710_v1 = vmax.f32 %v1634_v38, 0.0 }
 0x3cb   : > { %v2244_v8 = vpop.f32.mrf.mxu1 }
 0x3cd   : > { %v2245_v32 = vpop.f32.mrf.mxu1 }
 0x3ce   : > { %v2246_v36 = vadd.f32 %v2245_v32, %v2244_v8  ;;  %v1578_v8 = vadd.f32 %v3456_v30, %v3604_v53  ;;  %v1712_v32 = vmax.f32 %v1642_v26, 0.0  ;;  %v1570_v30 = vadd.f32 %v3604_v53, %v3465_v43  ;;  %v1810_v43 = vld [vmem:[%s3791_s3 + $0x1f0] sm:$0xff]  ;;  %v1807_v53 = vld [vmem:[%s3791_s3 + $0x1d8] sm:$0xff] }
 0x3d0   : > { %v1421_v3 = vmul.f32 0.00390625, %v2246_v36  ;;  %v1696_v9 = vmax.f32 %v1578_v8, 0.0  ;;  %v1711_v36 = vmax.f32 %v1639_v45, 0.0 }
 0x3d2   : > { %2545 = vmatmul.mubr.f32.vlgmr.msra.gmra.mxu1 %v1421_v3  ;;  %v1694_v3 = vmax.f32 %v1570_v30, 0.0 }
 0x3d3   : > { %2283 = vmatpush3.msra.mxu1 %v1708_v28  ;;  %1789 = vmatprep.mubr.f32.mxu1 %v2746_v20  ;;  %v1693_v28 = vmax.f32 %v1567_v57, 0.0 }
 0x3d4   : > { %2284 = vmatprep.subr.mxu1 %v1723_v52  ;;  %v1805_v52 = vld [vmem:[%s3791_s3 + $0x1c8] sm:$0xff] }
 0x3d5   : > { %2285 = vmatpush3.msra.mxu1 %v1707_v16  ;;  %v1803_v16 = vld [vmem:[%s3791_s3 + $0x1b8] sm:$0xff] }
 0x3d6   : > { %2286 = vmatprep.subr.mxu1 %v1722_v62  ;;  %v1800_v62 = vld [vmem:[%s3791_s3 + $0x1a0] sm:$0xff] }
 0x3d7   : > { %2287 = vmatpush3.msra.mxu1 %v1706_v41  ;;  %v1798_v41 = vld [vmem:[%s3791_s3 + $0x190] sm:$0xff] }
 0x3d8   : > { %2288 = vmatprep.subr.mxu1 %v1721_v24  ;;  %v1796_v24 = vld [vmem:[%s3791_s3 + $0x180] sm:$0xff] }
 0x3d9   : > { %2289 = vmatpush3.msra.mxu1 %v1705_v35 }
 0x3da   : > { %2290 = vmatprep.subr.mxu1 %v1720_v55 }
 0x3db   : > { %2291 = vmatpush3.msra.mxu1 %v1704_v10 }
 0x3dc   : > { %2292 = vmatprep.subr.mxu1 %v1719_v60 }
 0x3dd   : > { %2293 = vmatpush3.msra.mxu1 %v1703_v25 }
 0x3de   : > { %2294 = vmatprep.subr.mxu1 %v1718_v40 }
 0x3df   : > { %2295 = vmatpush3.msra.mxu1 %v1702_v21 }
 0x3e0   : > { %2296 = vmatprep.subr.mxu1 %v1717_v27 }
 0x3e1   : > { %2297 = vmatpush3.msra.mxu1 %v1701_v14 }
 0x3e2   : > { %2298 = vmatprep.subr.mxu1 %v1716_v59 }
 0x3e3   : > { %2299 = vmatpush3.msra.mxu1 %v1700_v42 }
 0x3e4   : > { %2300 = vmatprep.subr.mxu1 %v1715_v50 }
 0x3e5   : > { %2301 = vmatpush3.msra.mxu1 %v1699_v48 }
 0x3e6   : > { %2302 = vmatprep.subr.mxu1 %v1714_v44 }
 0x3e7   : > { %2303 = vmatpush3.msra.mxu1 %v1698_v4 }
 0x3e8   : > { %2304 = vmatprep.subr.mxu1 %v1713_v37 }
 0x3e9   : > { %2305 = vmatpush3.msra.mxu1 %v1697_v46 }
 0x3ea   : > { %2306 = vmatprep.subr.mxu1 %v1712_v32 }
 0x3eb   : > { %2307 = vmatpush3.msra.mxu1 %v1696_v9 }
 0x3ec   : > { %2308 = vmatprep.subr.mxu1 %v1711_v36 }
 0x3ed   : > { %2309 = vmatpush3.msra.mxu1 %v1695_v0 }
 0x3ee   : > { %2310 = vmatprep.subr.mxu1 %v1710_v1 }
 0x3ef   : > { %2311 = vmatpush3.msra.mxu1 %v1694_v3 }
 0x3f0   : > { %2312 = vmatprep.subr.mxu1 %v1709_v12 }
 0x3f1   : > { %2313 = vmatpush3.msra.mxu1 %v1693_v28 }
 0x3f2   : > { %1790 = vmatmul.mubr.f32.vlgmr.msra.gmra.mxu1 %v2746_v20  ;;  %2583 = vmatprep.subr.mxu1 %v2747_v29  ;;  %v1809_v20 = vld [vmem:[%s3791_s3 + $0x1e8] sm:$0xff] }
 0x3f3   : > { %2615 = vmatprep.mubr.msk.f32.mxu1 %vm2748_vm1, %v2747_v29  ;;  %2584 = vmatpush3.msra.mxu1 %v1811_v23 }
 0x3f4   : > { %2585 = vmatprep.subr.mxu1 %v2747_v29 }
 0x3f5   : > { %2586 = vmatpush3.msra.mxu1 %v1810_v43 }
 0x3f6   : > { %2587 = vmatprep.subr.mxu1 %v2747_v29 }
 0x3f7   : > { %2588 = vmatpush3.msra.mxu1 %v1809_v20 }
 0x3f8   : > { %2589 = vmatprep.subr.mxu1 %v2747_v29 }
 0x3f9   : > { %2590 = vmatpush3.msra.mxu1 %v1808_v17 }
 0x3fa   : > { %2591 = vmatprep.subr.mxu1 %v2747_v29 }
 0x3fb   : > { %2592 = vmatpush3.msra.mxu1 %v1807_v53 }
 0x3fc   : > { %2593 = vmatprep.subr.mxu1 %v2747_v29 }
 0x3fd   : > { %2594 = vmatpush3.msra.mxu1 %v1806_v51 }
 0x3fe   : > { %2595 = vmatprep.subr.mxu1 %v2747_v29 }
 0x3ff   : > { %2596 = vmatpush3.msra.mxu1 %v1805_v52 }
 0x400   : > { %2597 = vmatprep.subr.mxu1 %v2747_v29 }
 0x401   : > { %2598 = vmatpush3.msra.mxu1 %v1804_v56 }
 0x402   : > { %2599 = vmatprep.subr.mxu1 %v2747_v29 }
 0x403   : > { %2600 = vmatpush3.msra.mxu1 %v1803_v16 }
 0x404   : > { %2601 = vmatprep.subr.mxu1 %v2747_v29 }
 0x405   : > { %2602 = vmatpush3.msra.mxu1 %v1802_v15 }
 0x406   : > { %2603 = vmatprep.subr.mxu1 %v2747_v29 }
 0x407   : > { %2604 = vmatpush3.msra.mxu1 %v1801_v11 }
 0x408   : > { %2605 = vmatprep.subr.mxu1 %v2747_v29 }
 0x409   : > { %2606 = vmatpush3.msra.mxu1 %v1800_v62 }
 0x40a   : > { %2607 = vmatprep.subr.mxu1 %v2747_v29 }
 0x40b   : > { %2608 = vmatpush3.msra.mxu1 %v1799_v7 }
 0x40c   : > { %2609 = vmatprep.subr.mxu1 %v2747_v29 }
 0x40d   : > { %2610 = vmatpush3.msra.mxu1 %v1798_v41 }
 0x40e   : > { %2611 = vmatprep.subr.mxu1 %v2747_v29 }
 0x40f   : > { %2612 = vmatpush3.msra.mxu1 %v1797_v2 }
 0x410   : > { %2613 = vmatprep.subr.mxu1 %v2747_v29 }
 0x411   : > { %2614 = vmatpush3.msra.mxu1 %v1796_v24 }
 0x492   : > { %v1504_v13 = vpop.f32.mrf.mxu1 }
 0x493   : > { %v1508_v35 = vadd.f32 %v1504_v13, %v3620_v39 }
 0x494   : > { %v2546_v55 = vpop.f32.mrf.mxu1 }
 0x4b2   : > { %v2314_v34 = vpop.f32.mrf.mxu1 }
 0x4b4   : > { %v2315_v10 = vpop.f32.mrf.mxu1 }
 0x4b5   : > { %v2316_v47 = vadd.f32 %v2315_v10, %v2314_v34 }
 0x4b7   : > { %v1795_v60 = vmul.f32 0.00390625, %v2316_v47 }
 0x4b9   : > { %2616 = vmatmul.mubr.f32.vlgmr.msra.gmra.mxu1 %v1795_v60 }
 0x579   : > { %v1878_v29 = vpop.f32.mrf.mxu1 }
 0x57a   : > { %v1882_v19 = vadd.f32 %v1878_v29, %v1508_v35 }
 0x57b   : > { %v2617_v39 = vpop.f32.mrf.mxu1 }
 0x57c   : > { %1884 = vst.msk [vmem:[%s217_s6] sm:$0x1] %vm1883_vm2, %v1882_v19 }
 0x57d   : > { %2697 = shalt.err (!%p2694_p3)
}
 0x57e   : > { %s2698_s15 = scalar_lea.hbm %s3753_s10, 16  ;;  %s2702_s23 = scalar_lea.hbm %s3793_s5, 32 }
 0x57f   : > { %p2699_p4 = scmp.ne.s32.totalorder %s3753_s10, %s2698_s15  ;;  %p2703_p9 = scmp.lt.s32.totalorder %s3753_s10, %s3793_s5 }
 0x580   : > { %p2704_p10 = scmp.lt.s32.totalorder %s2702_s23, %s2698_s15 }
 0x581   : > { %p2700_p7 = pnand %p2699_p4, %p2818_p5 }
 0x582   : > { %p2705_p11 = por %p2704_p10, %p2703_p9 }
 0x583   : > { %p2701_p8 = pneg %p2700_p7 }
 0x585   : > { %p2706_p12 = pnand %p2705_p11, %p2701_p8 }
 0x587   : > { %2709 = shalt.err (!%p2706_p12)
}
 0x588   : > { %2618 = dma.vmem_to_hbm [thread:$0]  (%p2818_p5), %s1899_s7, 16, %s3753_s10, %s1886_s11  }
 0x589 PF: > { %p2624_p13 = scmp.ge.s32.totalorder %s2744_s21, 2  ;;  %s1910_s30 = sand.u32 1, %s2732_s18  }
 0x58a   : > { %s1911_s6 = scalar_lea.sflag [#allocation3], %s1910_s30 }
 0x58b   : > { %p2621_p0 = pnand %p2624_p13, %p2822_p6 }
 0x58d   : > { %p2622_p1 = pneg %p2621_p0 }
 0x58f   : > { %2727 = dma.done.wait (%p2622_p1), %s1911_s6, 16  }
 0x590   : > { %2729 = vsyncadd (%p2622_p1), %s1911_s6, 4294967280  ;;  %p15_p2 = scmp.ge.s32.totalorder %s2805_s24, 4   ;;  %s3796_s18 = smov %s2736_s19 }
 0x591   : > { %s3797_s19 = smov %s2740_s20  ;;  %s3798_s20 = smov %s2816_s27 }
 0x592   : > { %s3799_s21 = smov %s2805_s24  ;;  %17 = sbr.rel (!%p15_p2) target bundleno = 3 (0x3), region = 75 }
 0x597   :  { %1915 = vsyncpa [#allocation3], 1 }
 0x598   :  { %1917 = vsyncpa [#allocation3 + $0x1], 1 }

</bundles_post_ra>
